<compile_context>
chip_gen: v6e
topology: v6e:2x2x1
jax: 0.10.0
libtpu: 0.0.40
codegen_flags: <defaults>
</compile_context>

<pallas_src>
import functools

import jax
import jax.numpy as jnp
from jax.experimental import pallas as pl
from jax.experimental.pallas import tpu as pltpu

# Scoped VMEM limit.  Tiny shapes here need <2 MiB; raise toward ~100 MiB on
# v5e/v6e (128 MiB physical VMEM) for production image sizes, keep <=64 MiB on v7x.
_VMEM_LIMIT = 32 * 1024 * 1024


# ----------------------------------------------------------------------------
# In-kernel helper: 3x3 'same' conv as a single im2col MXU matmul.
# ----------------------------------------------------------------------------
def _im2col_matmul(pad_ref, w_ref, b_ref, H, W):
    """pad_ref: (H+2, W+2, Cin) f32 VMEM scratch with zero border, data at
    [1:H+1, 1:W+1].  w_ref: (9*Cin, Cout) bf16 (rows in (dy, dx, cin) order).
    b_ref: (1, Cout) f32.  Returns (H*W, Cout) f32."""
    Cin = pad_ref.shape[-1]
    taps = [pad_ref[dy:dy + H, dx:dx + W, :].reshape(H * W, Cin)
            for dy in range(3) for dx in range(3)]
    patches = jnp.concatenate(taps, axis=-1).astype(jnp.bfloat16)   # (H*W, 9*Cin)
    out = jnp.dot(patches, w_ref[...], preferred_element_type=jnp.float32)
    return out + b_ref[...]


# ----------------------------------------------------------------------------
# conv_in: 3x3 conv (3 -> channel), one image per grid step.
# ----------------------------------------------------------------------------
def _conv_in_kernel(x_ref, w_ref, b_ref, o_ref, pad_ref, *, H, W):
    Cout = w_ref.shape[-1]
    pad_ref[...] = jnp.zeros_like(pad_ref)
    pad_ref[1:H + 1, 1:W + 1, :] = x_ref[0]
    y = _im2col_matmul(pad_ref, w_ref, b_ref, H, W)
    o_ref[0] = y.reshape(H, W, Cout)


def conv_in(x, w, b):
    """x: (B, H, W, 3) f32.  w: (27, Cout) bf16.  b: (1, Cout) f32."""
    B, H, W, Cin = x.shape
    Cout = w.shape[-1]
    kernel = functools.partial(_conv_in_kernel, H=H, W=W)
    return pl.pallas_call(
        kernel,
        out_shape=jax.ShapeDtypeStruct((B, H, W, Cout), jnp.float32),
        grid=(B,),
        in_specs=[pl.BlockSpec((1, H, W, Cin), lambda bi: (bi, 0, 0, 0)),
                  pl.BlockSpec(w.shape, lambda bi: (0, 0)),
                  pl.BlockSpec(b.shape, lambda bi: (0, 0))],
        out_specs=pl.BlockSpec((1, H, W, Cout), lambda bi: (bi, 0, 0, 0)),
        scratch_shapes=[pltpu.VMEM((H + 2, W + 2, Cin), jnp.float32)],
        compiler_params=pltpu.CompilerParams(
            dimension_semantics=("parallel",),
            vmem_limit_bytes=_VMEM_LIMIT),
    )(x, w, b)


# ----------------------------------------------------------------------------
# Fused EncoderBlock (+ optional trailing 2x2 maxpool), one image per grid step.
# ----------------------------------------------------------------------------
def _encoder_block_kernel(x_ref, *refs, H, W, n_hid, n_out, has_id, pool, gain):
    if has_id:
        (wi, bi, w1, b1, w2, b2, w3, b3, w4, b4,
         o_ref, pad_in, pad_hid) = refs
    else:
        (w1, b1, w2, b2, w3, b3, w4, b4,
         o_ref, pad_in, pad_hid) = refs
    Cin = x_ref.shape[-1]

    xv = x_ref[0]                                        # (H, W, Cin) f32
    x_flat = xv.reshape(H * W, Cin)

    # Identity path: 1x1 conv when Cin != n_out, else pass-through.
    if has_id:
        idp = jnp.dot(x_flat.astype(jnp.bfloat16), wi[...],
                      preferred_element_type=jnp.float32) + bi[...]
    else:
        idp = x_flat                                     # Cin == n_out

    # Zero the halo buffers once; only interiors are overwritten below, so the
    # 1-wide zero border stays valid for every 3x3 conv in this block.
    pad_in[...] = jnp.zeros_like(pad_in)
    pad_hid[...] = jnp.zeros_like(pad_hid)

    # relu -> conv3x3 -> relu -> conv3x3 -> relu -> conv3x3 -> relu -> conv1x1
    pad_in[1:H + 1, 1:W + 1, :] = jnp.maximum(xv, 0.0)
    h = _im2col_matmul(pad_in, w1, b1, H, W)                       # (H*W, n_hid)
    pad_hid[1:H + 1, 1:W + 1, :] = jnp.maximum(h, 0.0).reshape(H, W, n_hid)
    h = _im2col_matmul(pad_hid, w2, b2, H, W)
    pad_hid[1:H + 1, 1:W + 1, :] = jnp.maximum(h, 0.0).reshape(H, W, n_hid)
    h = _im2col_matmul(pad_hid, w3, b3, H, W)
    h = jnp.maximum(h, 0.0)
    y = jnp.dot(h.astype(jnp.bfloat16), w4[...],
                preferred_element_type=jnp.float32) + b4[...]      # (H*W, n_out)

    y = idp + gain * y                                   # post_gain on conv path only

    if pool:
        # Fused 2x2 maxpool on the VMEM-resident result (full-res output never
        # touches HBM).  Rows of y are ordered h*W + w with W even.
        yw = y.reshape(H * W // 2, 2, n_out)
        yw = jnp.maximum(yw[:, 0, :], yw[:, 1, :])                 # (H*(W//2), n_out)
        yh = yw.reshape(H // 2, 2, W // 2, n_out)
        o_ref[0] = jnp.maximum(yh[:, 0, :, :], yh[:, 1, :, :])     # (H//2, W//2, n_out)
    else:
        o_ref[0] = y.reshape(H, W, n_out)


def encoder_block(x, p, *, pool, gain):
    """Fused DALL-E dVAE EncoderBlock (+ optional trailing 2x2 maxpool)."""
    B, H, W, Cin = x.shape
    n_hid, n_out = p["w4"].shape
    has_id = "wi" in p
    if pool:
        assert H % 2 == 0 and W % 2 == 0, "maxpool2x2 needs even spatial dims"
    Ho, Wo = (H // 2, W // 2) if pool else (H, W)

    kernel = functools.partial(_encoder_block_kernel, H=H, W=W, n_hid=n_hid,
                               n_out=n_out, has_id=has_id, pool=pool,
                               gain=float(gain))

    in_specs = [pl.BlockSpec((1, H, W, Cin), lambda bi: (bi, 0, 0, 0))]
    args = [x]

    def add_param(w, b):
        in_specs.append(pl.BlockSpec(w.shape, lambda bi: (0, 0)))
        in_specs.append(pl.BlockSpec(b.shape, lambda bi: (0, 0)))
        args.append(w)
        args.append(b)

    if has_id:
        add_param(p["wi"], p["bi"])
    add_param(p["w1"], p["b1"])
    add_param(p["w2"], p["b2"])
    add_param(p["w3"], p["b3"])
    add_param(p["w4"], p["b4"])

    # TODO(synk): for production image sizes, tile rows (grid=(B, H//TH)) with a
    # 1-row halo so one step fits v7x's 64 MiB VMEM and both TensorCores pipeline;
    # also consider a lane-dense (W*C) output layout when C << 128.
    return pl.pallas_call(
        kernel,
        out_shape=jax.ShapeDtypeStruct((B, Ho, Wo, n_out), jnp.float32),
        grid=(B,),
        in_specs=in_specs,
        out_specs=pl.BlockSpec((1, Ho, Wo, n_out), lambda bi: (bi, 0, 0, 0)),
        scratch_shapes=[pltpu.VMEM((H + 2, W + 2, Cin), jnp.float32),
                        pltpu.VMEM((H + 2, W + 2, n_hid), jnp.float32)],
        compiler_params=pltpu.CompilerParams(
            dimension_semantics=("parallel",),
            vmem_limit_bytes=_VMEM_LIMIT),
    )(*args)


# ----------------------------------------------------------------------------
# Dense (Linear) kernel: K-tiled accumulation with fused input/output ReLU.
# ----------------------------------------------------------------------------
def _dense_kernel(x_ref, w_ref, b_ref, o_ref, acc_ref, *, pre_relu, post_relu):
    k = pl.program_id(0)

    @pl.when(k == 0)
    def _():
        acc_ref[...] = jnp.zeros_like(acc_ref)

    xv = x_ref[...]
    if pre_relu:
        xv = jnp.maximum(xv, 0.0)
    acc_ref[...] += jnp.dot(xv.astype(jnp.bfloat16), w_ref[...],
                            preferred_element_type=jnp.float32)

    @pl.when(k == pl.num_programs(0) - 1)
    def _():
        y = acc_ref[...] + b_ref[...]
        if post_relu:
            y = jnp.maximum(y, 0.0)
        o_ref[...] = y


def dense(x, w, b, *, pre_relu, post_relu, tk=256):
    """x: (B, K) f32, w: (K, N) bf16, b: (1, N) f32."""
    B, K = x.shape
    N = w.shape[1]
    if K % tk != 0:
        tk = K
    kernel = functools.partial(_dense_kernel, pre_relu=pre_relu,
                               post_relu=post_relu)
    return pl.pallas_call(
        kernel,
        out_shape=jax.ShapeDtypeStruct((B, N), jnp.float32),
        grid=(K // tk,),
        in_specs=[pl.BlockSpec((B, tk), lambda k: (0, k)),
                  pl.BlockSpec((tk, N), lambda k: (k, 0)),
                  pl.BlockSpec((1, N), lambda k: (0, 0))],
        out_specs=pl.BlockSpec((B, N), lambda k: (0, 0)),
        scratch_shapes=[pltpu.VMEM((B, N), jnp.float32)],
        compiler_params=pltpu.CompilerParams(
            dimension_semantics=("arbitrary",),
            vmem_limit_bytes=_VMEM_LIMIT),
    )(x, w, b)


# ----------------------------------------------------------------------------
# Parameter construction (deterministic, synthetic; PyTorch-convention layouts).
# ----------------------------------------------------------------------------
def _conv_params(key, k, cin, cout):
    kw, kb = jax.random.split(key)
    w = jax.random.normal(kw, (k, k, cin, cout), jnp.float32)
    w = w * (1.0 / (k * k * cin)) ** 0.5
    b = jax.random.normal(kb, (cout,), jnp.float32) * 0.1
    return (w, b)


def make_encoder_block_params(key, n_in, n_out):
    n_hid = n_out // 4
    keys = jax.random.split(key, 5)
    p = {
        "conv1": _conv_params(keys[0], 3, n_in, n_hid),
        "conv2": _conv_params(keys[1], 3, n_hid, n_hid),
        "conv3": _conv_params(keys[2], 3, n_hid, n_hid),
        "conv4": _conv_params(keys[3], 1, n_hid, n_out),
    }
    if n_in != n_out:
        p["id"] = _conv_params(keys[4], 1, n_in, n_out)
    return p


def make_base_encoder_params(key, *, channel, group_count, n_blk_per_group,
                             img_size, hidden_dim):
    output_size = ((img_size // 2 ** (group_count - 1)) ** 2
                   * (2 ** (group_count - 1) * channel))
    keys = iter(jax.random.split(key, 256))
    params = {"conv_in": _conv_params(next(keys), 3, 3, channel), "groups": []}

    # group_1: channel -> channel, then pool
    blocks = [make_encoder_block_params(next(keys), channel, channel)
              for _ in range(n_blk_per_group)]
    params["groups"].append({"blocks": blocks, "pool": True})

    # group_{j+2}: 2**j*channel -> 2**(j+1)*channel, then pool
    for j in range(group_count - 2):
        blocks = []
        for i in range(n_blk_per_group):
            n_in = 2 ** j * channel if i == 0 else 2 ** (j + 1) * channel
            blocks.append(make_encoder_block_params(next(keys), n_in,
                                                    2 ** (j + 1) * channel))
        params["groups"].append({"blocks": blocks, "pool": True})

    # group_last: 2**(gc-2)*channel -> 2**(gc-1)*channel, no pool
    blocks = []
    for i in range(n_blk_per_group):
        n_in = (2 ** (group_count - 2) * channel if i == 0
                else 2 ** (group_count - 1) * channel)
        blocks.append(make_encoder_block_params(next(keys), n_in,
                                                2 ** (group_count - 1) * channel))
    params["groups"].append({"blocks": blocks, "pool": False})

    # dense head (w1 rows indexed in PyTorch NCHW-flatten order)
    k1, k2, k3, k4 = jax.random.split(next(keys), 4)
    params["w1"] = jax.random.normal(k1, (output_size, hidden_dim),
                                     jnp.float32) * (1.0 / output_size) ** 0.5
    params["b1"] = jax.random.normal(k2, (hidden_dim,), jnp.float32) * 0.1
    params["w2"] = jax.random.normal(k3, (hidden_dim, hidden_dim),
                                     jnp.float32) * (1.0 / hidden_dim) ** 0.5
    params["b2"] = jax.random.normal(k4, (hidden_dim,), jnp.float32) * 0.1
    return params


# ----------------------------------------------------------------------------
# One-time weight preprocessing to kernel-friendly layouts.
# ----------------------------------------------------------------------------
def _prep_conv(wb):
    """(K,K,Cin,Cout) f32 -> ((K*K*Cin, Cout) bf16, (1, Cout) f32).  Row order
    (dy, dx, cin) matches the in-kernel im2col tap concatenation."""
    w, b = wb
    k, _, cin, cout = w.shape
    return (w.reshape(k * k * cin, cout).astype(jnp.bfloat16),
            b.reshape(1, cout).astype(jnp.float32))


def _prep_block(p):
    out = {}
    if "id" in p:
        out["wi"], out["bi"] = _prep_conv(p["id"])
    for name, tag in (("conv1", "1"), ("conv2", "2"),
                      ("conv3", "3"), ("conv4", "4")):
        out["w" + tag], out["b" + tag] = _prep_conv(p[name])
    return out


def prepare_params(params, *, channel, group_count, n_blk_per_group, img_size,
                   hidden_dim):
    n_layers = group_count * n_blk_per_group
    prep = {"post_gain": 1.0 / n_layers ** 2,
            "conv_in": _prep_conv(params["conv_in"]),
            "groups": [{"pool": g["pool"],
                        "blocks": [_prep_block(b) for b in g["blocks"]]}
                       for g in params["groups"]]}
    # Fold PyTorch's NCHW x.view(B, -1) flatten into the first dense weight:
    # permute its rows from NCHW-flat to NHWC-flat so the kernels can consume
    # the NHWC feature map with a free reshape (no activation transpose in HBM).
    hf = wf = img_size // 2 ** (group_count - 1)
    cf = 2 ** (group_count - 1) * channel
    w1 = params["w1"].reshape(cf, hf, wf, hidden_dim)
    w1 = jnp.transpose(w1, (1, 2, 0, 3)).reshape(hf * wf * cf, hidden_dim)
    prep["w1"] = w1.astype(jnp.bfloat16)
    prep["b1"] = params["b1"].reshape(1, hidden_dim).astype(jnp.float32)
    prep["w2"] = params["w2"].astype(jnp.bfloat16)
    prep["b2"] = params["b2"].reshape(1, hidden_dim).astype(jnp.float32)
    return prep


# ----------------------------------------------------------------------------
# Forward pass.
# ----------------------------------------------------------------------------
def base_encoder_forward(x_nchw, prep):
    # NCHW (PyTorch convention) -> NHWC for the kernels (layout glue only).
    x = jnp.transpose(x_nchw, (0, 2, 3, 1)).astype(jnp.float32)
    h = conv_in(x, *prep["conv_in"])
    for group in prep["groups"]:
        n_blocks = len(group["blocks"])
        for i, blk in enumerate(group["blocks"]):
            h = encoder_block(h, blk,
                              pool=group["pool"] and i == n_blocks - 1,
                              gain=prep["post_gain"])
    feat = h.reshape(h.shape[0], -1)   # NHWC flatten; w1 rows were pre-permuted to match
    h1 = dense(feat, prep["w1"], prep["b1"], pre_relu=True, post_relu=True)
    return dense(h1, prep["w2"], prep["b2"], pre_relu=False, post_relu=True)


if __name__ == "__main__":
    # Small synthetic config consistent with the module:
    #   channel=8, group_count=3, n_blk_per_group=1, img_size=16, hidden_dim=32
    #   => n_layers=3, output_size=(16//4)**2 * (4*8) = 512
    channel, group_count, n_blk_per_group = 8, 3, 1
    img_size, hidden_dim = 16, 32

    key = jax.random.PRNGKey(0)
    kx, kp = jax.random.split(key)
    x = jax.random.normal(kx, (2, 3, img_size, img_size), jnp.float32)  # NCHW
    params = make_base_encoder_params(
        kp, channel=channel, group_count=group_count,
        n_blk_per_group=n_blk_per_group, img_size=img_size,
        hidden_dim=hidden_dim)
    prep = prepare_params(params, channel=channel, group_count=group_count,
                          n_blk_per_group=n_blk_per_group, img_size=img_size,
                          hidden_dim=hidden_dim)

    out = base_encoder_forward(x, prep)
    out = jax.block_until_ready(out)
    assert out.shape == (2, hidden_dim), out.shape
    assert bool(jnp.all(jnp.isfinite(out)))
    print("KERNEL_OK")
</pallas_src>

<mosaic_0001>
module attributes {stable_mosaic.version = 11 : i64} {
  func.func @_conv_in_kernel(%arg0: i32, %arg1: memref<1x16x16x3xf32, #tpu.memory_space<vmem>>, %arg2: memref<27x8xbf16, #tpu.memory_space<vmem>>, %arg3: memref<1x8xf32, #tpu.memory_space<vmem>>, %arg4: memref<1x16x16x8xf32, #tpu.memory_space<vmem>>, %arg5: memref<18x18x3xf32, #tpu.memory_space<vmem>>) attributes {dimension_semantics = [#tpu.dimension_semantics<parallel>], iteration_bounds = array<i64: 2>, scalar_prefetch = 0 : i64, scratch_operands = 1 : i64, tpu.core_type = #tpu.core_type<tc>, window_params = [{transform_indices = @transform_0, window_bounds = array<i64: 1, 16, 16, 3>}, {pipeline_mode = #tpu.pipeline_mode<synchronous>, transform_indices = @transform_1, window_bounds = array<i64: 27, 8>}, {pipeline_mode = #tpu.pipeline_mode<synchronous>, transform_indices = @transform_2, window_bounds = array<i64: 1, 8>}, {transform_indices = @transform_3, window_bounds = array<i64: 1, 16, 16, 8>}]} {
    %cst = arith.constant 0.000000e+00 : f32
    %0 = vector.broadcast %cst : f32 to vector<18x18x3xf32>
    %c0 = arith.constant 0 : index
    %c0_0 = arith.constant 0 : index
    %c0_1 = arith.constant 0 : index
    %1 = vector.load %arg5[%c0, %c0_0, %c0_1] : memref<18x18x3xf32, #tpu.memory_space<vmem>>, vector<18x18x3xf32>
    tpu.vector_store %arg5[%c0, %c0_0, %c0_1], %0 {strides = array<i32>} : memref<18x18x3xf32, #tpu.memory_space<vmem>>, vector<18x18x3xf32>,
    %c0_2 = arith.constant 0 : index
    %c0_3 = arith.constant 0 : index
    %c0_4 = arith.constant 0 : index
    %c0_5 = arith.constant 0 : index
    %2 = vector.load %arg1[%c0_2, %c0_3, %c0_4, %c0_5] : memref<1x16x16x3xf32, #tpu.memory_space<vmem>>, vector<1x16x16x3xf32>
    %3 = vector.shape_cast %2 : vector<1x16x16x3xf32> to vector<16x16x3xf32>
    %c1 = arith.constant 1 : index
    %c1_6 = arith.constant 1 : index
    %c0_7 = arith.constant 0 : index
    %4 = vector.load %arg5[%c1, %c1_6, %c0_7] : memref<18x18x3xf32, #tpu.memory_space<vmem>>, vector<16x16x3xf32>
    tpu.vector_store %arg5[%c1, %c1_6, %c0_7], %3 {strides = array<i32>} : memref<18x18x3xf32, #tpu.memory_space<vmem>>, vector<16x16x3xf32>,
    %c0_8 = arith.constant 0 : index
    %c0_9 = arith.constant 0 : index
    %c0_10 = arith.constant 0 : index
    %5 = vector.load %arg5[%c0_8, %c0_9, %c0_10] : memref<18x18x3xf32, #tpu.memory_space<vmem>>, vector<16x16x3xf32>
    %6 = vector.shape_cast %5 : vector<16x16x3xf32> to vector<256x3xf32>
    %c0_11 = arith.constant 0 : index
    %c1_12 = arith.constant 1 : index
    %c0_13 = arith.constant 0 : index
    %7 = vector.load %arg5[%c0_11, %c1_12, %c0_13] : memref<18x18x3xf32, #tpu.memory_space<vmem>>, vector<16x16x3xf32>
    %8 = vector.shape_cast %7 : vector<16x16x3xf32> to vector<256x3xf32>
    %c0_14 = arith.constant 0 : index
    %c2 = arith.constant 2 : index
    %c0_15 = arith.constant 0 : index
    %9 = vector.load %arg5[%c0_14, %c2, %c0_15] : memref<18x18x3xf32, #tpu.memory_space<vmem>>, vector<16x16x3xf32>
    %10 = vector.shape_cast %9 : vector<16x16x3xf32> to vector<256x3xf32>
    %c1_16 = arith.constant 1 : index
    %c0_17 = arith.constant 0 : index
    %c0_18 = arith.constant 0 : index
    %11 = vector.load %arg5[%c1_16, %c0_17, %c0_18] : memref<18x18x3xf32, #tpu.memory_space<vmem>>, vector<16x16x3xf32>
    %12 = vector.shape_cast %11 : vector<16x16x3xf32> to vector<256x3xf32>
    %c1_19 = arith.constant 1 : index
    %c1_20 = arith.constant 1 : index
    %c0_21 = arith.constant 0 : index
    %13 = vector.load %arg5[%c1_19, %c1_20, %c0_21] : memref<18x18x3xf32, #tpu.memory_space<vmem>>, vector<16x16x3xf32>
    %14 = vector.shape_cast %13 : vector<16x16x3xf32> to vector<256x3xf32>
    %c1_22 = arith.constant 1 : index
    %c2_23 = arith.constant 2 : index
    %c0_24 = arith.constant 0 : index
    %15 = vector.load %arg5[%c1_22, %c2_23, %c0_24] : memref<18x18x3xf32, #tpu.memory_space<vmem>>, vector<16x16x3xf32>
    %16 = vector.shape_cast %15 : vector<16x16x3xf32> to vector<256x3xf32>
    %c2_25 = arith.constant 2 : index
    %c0_26 = arith.constant 0 : index
    %c0_27 = arith.constant 0 : index
    %17 = vector.load %arg5[%c2_25, %c0_26, %c0_27] : memref<18x18x3xf32, #tpu.memory_space<vmem>>, vector<16x16x3xf32>
    %18 = vector.shape_cast %17 : vector<16x16x3xf32> to vector<256x3xf32>
    %c2_28 = arith.constant 2 : index
    %c1_29 = arith.constant 1 : index
    %c0_30 = arith.constant 0 : index
    %19 = vector.load %arg5[%c2_28, %c1_29, %c0_30] : memref<18x18x3xf32, #tpu.memory_space<vmem>>, vector<16x16x3xf32>
    %20 = vector.shape_cast %19 : vector<16x16x3xf32> to vector<256x3xf32>
    %c2_31 = arith.constant 2 : index
    %c2_32 = arith.constant 2 : index
    %c0_33 = arith.constant 0 : index
    %21 = vector.load %arg5[%c2_31, %c2_32, %c0_33] : memref<18x18x3xf32, #tpu.memory_space<vmem>>, vector<16x16x3xf32>
    %22 = vector.shape_cast %21 : vector<16x16x3xf32> to vector<256x3xf32>
    %23 = tpu.concatenate %6, %8, %10, %12, %14, %16, %18, %20, %22 in 1 : vector<256x3xf32>, vector<256x3xf32>, vector<256x3xf32>, vector<256x3xf32>, vector<256x3xf32>, vector<256x3xf32>, vector<256x3xf32>, vector<256x3xf32>, vector<256x3xf32> -> vector<256x27xf32>
    %24 = arith.truncf %23 : vector<256x27xf32> to vector<256x27xbf16>
    %c0_34 = arith.constant 0 : index
    %c0_35 = arith.constant 0 : index
    %25 = vector.load %arg2[%c0_34, %c0_35] : memref<27x8xbf16, #tpu.memory_space<vmem>>, vector<27x8xbf16>
    %cst_36 = arith.constant dense<0.000000e+00> : vector<256x8xf32>
    %26 = tpu.matmul %24, %25, %cst_36 {dimension_numbers = #tpu.dot_dimension_numbers<[1], [0], [0], [1], [0, 0, 1, 1], [], []>} : vector<256x27xbf16>, vector<27x8xbf16>, vector<256x8xf32> -> vector<256x8xf32>
    %c0_37 = arith.constant 0 : index
    %c0_38 = arith.constant 0 : index
    %27 = vector.load %arg3[%c0_37, %c0_38] : memref<1x8xf32, #tpu.memory_space<vmem>>, vector<1x8xf32>
    %28 = vector.broadcast %27 : vector<1x8xf32> to vector<256x8xf32>
    %29 = arith.addf %26, %28 : vector<256x8xf32>
    %30 = vector.shape_cast %29 : vector<256x8xf32> to vector<16x16x8xf32>
    %c0_39 = arith.constant 0 : index
    %c0_40 = arith.constant 0 : index
    %c0_41 = arith.constant 0 : index
    %c0_42 = arith.constant 0 : index
    %31 = vector.load %arg4[%c0_39, %c0_40, %c0_41, %c0_42] : memref<1x16x16x8xf32, #tpu.memory_space<vmem>>, vector<1x16x16x8xf32>
    %32 = vector.shape_cast %31 : vector<1x16x16x8xf32> to vector<16x16x8xf32>
    %33 = vector.shape_cast %30 : vector<16x16x8xf32> to vector<1x16x16x8xf32>
    tpu.vector_store %arg4[%c0_39, %c0_40, %c0_41, %c0_42], %33 {strides = array<i32>} : memref<1x16x16x8xf32, #tpu.memory_space<vmem>>, vector<1x16x16x8xf32>,
    return
  }
  func.func @transform_0(%arg0: i32) -> (i32, i32, i32, i32) {
    %c0_i32 = arith.constant 0 : i32
    %c0_i32_0 = arith.constant 0 : i32
    %c0_i32_1 = arith.constant 0 : i32
    %c0_i32_2 = arith.constant 0 : i32
    return %arg0, %c0_i32, %c0_i32_0, %c0_i32_1 : i32, i32, i32, i32
  }
  func.func @transform_1(%arg0: i32) -> (i32, i32) {
    %c0_i32 = arith.constant 0 : i32
    %c0_i32_0 = arith.constant 0 : i32
    %c0_i32_1 = arith.constant 0 : i32
    return %c0_i32, %c0_i32_0 : i32, i32
  }
  func.func @transform_2(%arg0: i32) -> (i32, i32) {
    %c0_i32 = arith.constant 0 : i32
    %c0_i32_0 = arith.constant 0 : i32
    %c0_i32_1 = arith.constant 0 : i32
    return %c0_i32, %c0_i32_0 : i32, i32
  }
  func.func @transform_3(%arg0: i32) -> (i32, i32, i32, i32) {
    %c0_i32 = arith.constant 0 : i32
    %c0_i32_0 = arith.constant 0 : i32
    %c0_i32_1 = arith.constant 0 : i32
    %c0_i32_2 = arith.constant 0 : i32
    return %arg0, %c0_i32, %c0_i32_0, %c0_i32_1 : i32, i32, i32, i32
  }
}

</mosaic_0001>

<bundles_post_ra>
// kernel: tpu_custom_call.1
= control target key start
LH: loop header
LB: loop body
LE: loop exit
PB: predicated region body
PF: predicated region fallthrough
CT: control target
= control target key end

     0   :  { %s3004_s12 = smov 0   ;;  %s4377_s0 = inlined_call_operand.vmem [shape: f32[2,16,16,3], index: 0, kind: input, shape index: {}]   ;;  %s4378_s1 = inlined_call_operand.vmem [shape: bf16[27,8], index: 1, kind: input, shape index: {}]   ;;  %s4379_s2 = inlined_call_operand.vmem [shape: f32[1,8], index: 2, kind: input, shape index: {}]   ;;  %s4380_s3 = inlined_call_operand.vmem [shape: f32[2,16,16,8], index: 3, kind: output, shape index: {}]  }
   0x1 LB: > { %s2212_s13 = sadd.s32 4294967295, %s2972_s12   ;;  %p2216_p0 = scmp.ge.s32.totalorder %s2972_s12, 1  ;;  %s2972_s12 = sphi %s3004_s12, %s13_s12  }
   0x2   : > { %p137_p1 = scmp.lt.s32.totalorder %s2972_s12, 3 }
   0x4   : > { %p138_p2 = pnand %p2216_p0, %p137_p1 }
   0x6   : > { %141 = sbr.rel (%p138_p2) target bundleno = 623 (0x26f), region = 32 }
   0xb   : > { %vm172_vm0 = vcmask 23552   ;;  %vm175_vm1 = vcmask 17408   ;;  %p3014_p3 = scmp.lt.s32.totalorder %s2212_s13, 1  ;;  %v2974_v0 = vmov 0.0   ;;  %s2975_s19 = smov 3   ;;  %vm1956_vm2 = vcmask 1044480  }
   0xc   : > { %173 = vst.msk [vmem:[#allocation2] sm:$0xff] %vm172_vm0, %v2974_v0  ;;  %174 = vst.msk [vmem:[#allocation2 + $0x8] sm:$0xff] %vm172_vm0, %v2974_v0  ;;  %s2976_s20 = smov 6   ;;  %s2977_s21 = smov 9   ;;  %vm1957_vm3 = vcmask 1045504   ;;  %vm1638_vm4 = vcmask 48128  }
   0xd   : > { %176 = vst.msk [vmem:[#allocation2 + $0x10] sm:$0x3] %vm175_vm1, %v2974_v0  ;;  %179 = vst.msk [vmem:[#allocation2 + $0x28] sm:$0x3] %vm175_vm1, %v2974_v0  ;;  %s4475_s13 = smov (!%p3014_p3, %s2212_s13), 1  ;;  %s2978_s22 = smov 12  }
   0xe   : > { %177 = vst.msk [vmem:[#allocation2 + $0x18] sm:$0xff] %vm172_vm0, %v2974_v0  ;;  %178 = vst.msk [vmem:[#allocation2 + $0x20] sm:$0xff] %vm172_vm0, %v2974_v0  ;;  %s2242_s15 = sshll.u32 %s4475_s13, 8  ;;  %s2979_s23 = smov 15   ;;  %vm1671_vm5 = vcmask 72704   ;;  %vm1704_vm6 = vcmask 97280  }
   0xf   : > { %180 = vst.msk [vmem:[#allocation2 + $0x30] sm:$0xff] %vm172_vm0, %v2974_v0  ;;  %181 = vst.msk [vmem:[#allocation2 + $0x38] sm:$0xff] %vm172_vm0, %v2974_v0  ;;  %s3084_s18 = scalar_lea.vmem %s4377_s0, %s2242_s15  ;;  %s2980_s24 = smov 18   ;;  %vm1737_vm7 = vcmask 121856   ;;  %vm1770_vm8 = vcmask 146432   ;;  %vm1803_vm9 = vcmask 171008  }
  0x10   : > { %182 = vst.msk [vmem:[#allocation2 + $0x40] sm:$0x3] %vm175_vm1, %v2974_v0  ;;  %185 = vst.msk [vmem:[#allocation2 + $0x58] sm:$0x3] %vm175_vm1, %v2974_v0  ;;  %v230_v1 = vld [vmem:[%s3084_s18 + $0x10] sm:$0xff]  ;;  %v231_v2 = vld [vmem:[%s3084_s18 + $0x18] sm:$0xff]  ;;  %s4276_s8 = scalar_lea.vmem %s4380_s3, %s2242_s15 }
  0x11   : > { %183 = vst.msk [vmem:[#allocation2 + $0x48] sm:$0xff] %vm172_vm0, %v2974_v0  ;;  %184 = vst.msk [vmem:[#allocation2 + $0x50] sm:$0xff] %vm172_vm0, %v2974_v0  ;;  %v228_v3 = vld [vmem:[%s3084_s18] sm:$0xff]  ;;  %v229_v4 = vld [vmem:[%s3084_s18 + $0x8] sm:$0xff]  ;;  %s2982_s29 = smov 21   ;;  %s2983_s30 = smov 24  }
  0x12   : > { %186 = vst.msk [vmem:[#allocation2 + $0x60] sm:$0xff] %vm172_vm0, %v2974_v0  ;;  %187 = vst.msk [vmem:[#allocation2 + $0x68] sm:$0xff] %vm172_vm0, %v2974_v0  ;;  %v232_v5 = vld [vmem:[%s3084_s18 + $0x20] sm:$0xff]  ;;  %v233_v6 = vld [vmem:[%s3084_s18 + $0x28] sm:$0xff]  ;;  %vm1836_vm10 = vcmask 195584   ;;  %vm1907_vm11 = vcmask 220160  }
  0x13   : > { %188 = vst.msk [vmem:[#allocation2 + $0x70] sm:$0x3] %vm175_vm1, %v2974_v0  ;;  %191 = vst.msk [vmem:[#allocation2 + $0x88] sm:$0x3] %vm175_vm1, %v2974_v0  ;;  %v325_v7 = vld [vmem:[#allocation2 + $0x1] sm:$0xff]  ;;  %v234_v9 = vld [vmem:[%s3084_s18 + $0x30] sm:$0xff] }
  0x14   : > { %189 = vst.msk [vmem:[#allocation2 + $0x78] sm:$0xff] %vm172_vm0, %v2974_v0  ;;  %190 = vst.msk [vmem:[#allocation2 + $0x80] sm:$0xff] %vm172_vm0, %v2974_v0  ;;  %v326_v8 = vld [vmem:[#allocation2 + $0x9] sm:$0xff]  ;;  %v235_v11 = vld [vmem:[%s3084_s18 + $0x38] sm:$0xff]  ;;  %vm2124_vm12 = vcmask 64512  }
  0x15   : > { %192 = vst.msk [vmem:[#allocation2 + $0x90] sm:$0xff] %vm172_vm0, %v2974_v0  ;;  %193 = vst.msk [vmem:[#allocation2 + $0x98] sm:$0xff] %vm172_vm0, %v2974_v0  ;;  %v2320_v10 = vpack.i.bf16 %v326_v8, %v325_v7  ;;  %v236_v12 = vld [vmem:[%s3084_s18 + $0x40] sm:$0xff]  ;;  %v237_v13 = vld [vmem:[%s3084_s18 + $0x48] sm:$0xff] }
  0x16   : > { %194 = vst.msk [vmem:[#allocation2 + $0xa0] sm:$0x3] %vm175_vm1, %v2974_v0  ;;  %197 = vst.msk [vmem:[#allocation2 + $0xb8] sm:$0x3] %vm175_vm1, %v2974_v0  ;;  %v238_v14 = vld [vmem:[%s3084_s18 + $0x50] sm:$0xff]  ;;  %v239_v15 = vld [vmem:[%s3084_s18 + $0x58] sm:$0xff] }
  0x17   : > { %195 = vst.msk [vmem:[#allocation2 + $0xa8] sm:$0xff] %vm172_vm0, %v2974_v0  ;;  %196 = vst.msk [vmem:[#allocation2 + $0xb0] sm:$0xff] %vm172_vm0, %v2974_v0  ;;  %v240_v16 = vld [vmem:[%s3084_s18 + $0x60] sm:$0xff]  ;;  %2321 = vrot.lane.b32.xlu0 %v2320_v10, %s2975_s19  ;;  %v241_v17 = vld [vmem:[%s3084_s18 + $0x68] sm:$0xff] }
  0x18   : > { %198 = vst.msk [vmem:[#allocation2 + $0xc0] sm:$0xff] %vm172_vm0, %v2974_v0  ;;  %199 = vst.msk [vmem:[#allocation2 + $0xc8] sm:$0xff] %vm172_vm0, %v2974_v0  ;;  %v242_v18 = vld [vmem:[%s3084_s18 + $0x70] sm:$0xff]  ;;  %v243_v19 = vld [vmem:[%s3084_s18 + $0x78] sm:$0xff] }
  0x19   : > { %200 = vst.msk [vmem:[#allocation2 + $0xd0] sm:$0x3] %vm175_vm1, %v2974_v0  ;;  %203 = vst.msk [vmem:[#allocation2 + $0xe8] sm:$0x3] %vm175_vm1, %v2974_v0  ;;  %v244_v20 = vld [vmem:[%s3084_s18 + $0x80] sm:$0xff]  ;;  %v245_v21 = vld [vmem:[%s3084_s18 + $0x88] sm:$0xff] }
  0x1a   : > { %201 = vst.msk [vmem:[#allocation2 + $0xd8] sm:$0xff] %vm172_vm0, %v2974_v0  ;;  %202 = vst.msk [vmem:[#allocation2 + $0xe0] sm:$0xff] %vm172_vm0, %v2974_v0  ;;  %v246_v22 = vld [vmem:[%s3084_s18 + $0x90] sm:$0xff]  ;;  %v247_v23 = vld [vmem:[%s3084_s18 + $0x98] sm:$0xff] }
  0x1b   : > { %204 = vst.msk [vmem:[#allocation2 + $0xf0] sm:$0xff] %vm172_vm0, %v2974_v0  ;;  %205 = vst.msk [vmem:[#allocation2 + $0xf8] sm:$0xff] %vm172_vm0, %v2974_v0  ;;  %v248_v24 = vld [vmem:[%s3084_s18 + $0xa0] sm:$0xff]  ;;  %v249_v25 = vld [vmem:[%s3084_s18 + $0xa8] sm:$0xff] }
  0x1c   : > { %206 = vst.msk [vmem:[#allocation2 + $0x100] sm:$0x3] %vm175_vm1, %v2974_v0  ;;  %209 = vst.msk [vmem:[#allocation2 + $0x118] sm:$0x3] %vm175_vm1, %v2974_v0  ;;  %v250_v35 = vld [vmem:[%s3084_s18 + $0xb0] sm:$0xff]  ;;  %v251_v36 = vld [vmem:[%s3084_s18 + $0xb8] sm:$0xff] }
  0x1d   : > { %207 = vst.msk [vmem:[#allocation2 + $0x108] sm:$0xff] %vm172_vm0, %v2974_v0  ;;  %208 = vst.msk [vmem:[#allocation2 + $0x110] sm:$0xff] %vm172_vm0, %v2974_v0  ;;  %v252_v57 = vld [vmem:[%s3084_s18 + $0xc0] sm:$0xff]  ;;  %v253_v58 = vld [vmem:[%s3084_s18 + $0xc8] sm:$0xff] }
  0x1e   : > { %210 = vst.msk [vmem:[#allocation2 + $0x120] sm:$0xff] %vm172_vm0, %v2974_v0  ;;  %211 = vst.msk [vmem:[#allocation2 + $0x128] sm:$0xff] %vm172_vm0, %v2974_v0  ;;  %v254_v59 = vld [vmem:[%s3084_s18 + $0xd0] sm:$0xff]  ;;  %v255_v61 = vld [vmem:[%s3084_s18 + $0xd8] sm:$0xff] }
  0x1f   : > { %212 = vst.msk [vmem:[#allocation2 + $0x130] sm:$0x3] %vm175_vm1, %v2974_v0  ;;  %215 = vst.msk [vmem:[#allocation2 + $0x148] sm:$0x3] %vm175_vm1, %v2974_v0  ;;  %v256_v62 = vld [vmem:[%s3084_s18 + $0xe0] sm:$0xff]  ;;  %v257_v63 = vld [vmem:[%s3084_s18 + $0xe8] sm:$0xff] }
  0x20   : > { %213 = vst.msk [vmem:[#allocation2 + $0x138] sm:$0xff] %vm172_vm0, %v2974_v0  ;;  %214 = vst.msk [vmem:[#allocation2 + $0x140] sm:$0xff] %vm172_vm0, %v2974_v0 }
  0x21   : > { %216 = vst.msk [vmem:[#allocation2 + $0x150] sm:$0xff] %vm172_vm0, %v2974_v0  ;;  %217 = vst.msk [vmem:[#allocation2 + $0x158] sm:$0xff] %vm172_vm0, %v2974_v0 }
  0x22   : > { %218 = vst.msk [vmem:[#allocation2 + $0x160] sm:$0x3] %vm175_vm1, %v2974_v0  ;;  %221 = vst.msk [vmem:[#allocation2 + $0x178] sm:$0x3] %vm175_vm1, %v2974_v0 }
  0x23   : > { %219 = vst.msk [vmem:[#allocation2 + $0x168] sm:$0xff] %vm172_vm0, %v2974_v0  ;;  %220 = vst.msk [vmem:[#allocation2 + $0x170] sm:$0xff] %vm172_vm0, %v2974_v0 }
  0x24   : > { %222 = vst.msk [vmem:[#allocation2 + $0x180] sm:$0xff] %vm172_vm0, %v2974_v0  ;;  %223 = vst.msk [vmem:[#allocation2 + $0x188] sm:$0xff] %vm172_vm0, %v2974_v0 }
  0x25   : > { %224 = vst.msk [vmem:[#allocation2 + $0x190] sm:$0x3] %vm175_vm1, %v2974_v0  ;;  %227 = vst.msk [vmem:[#allocation2 + $0x1a8] sm:$0x3] %vm175_vm1, %v2974_v0 }
  0x26   : > { %225 = vst.msk [vmem:[#allocation2 + $0x198] sm:$0xff] %vm172_vm0, %v2974_v0  ;;  %226 = vst.msk [vmem:[#allocation2 + $0x1a0] sm:$0xff] %vm172_vm0, %v2974_v0 }
  0x27   : > { %263 = vst.msk [vmem:[#allocation2 + $0x31] sm:$0xff] %vm172_vm0, %v230_v1  ;;  %264 = vst.msk [vmem:[#allocation2 + $0x39] sm:$0xff] %vm172_vm0, %v231_v2 }
  0x28   : > { %261 = vst.msk [vmem:[#allocation2 + $0x19] sm:$0xff] %vm172_vm0, %v228_v3  ;;  %262 = vst.msk [vmem:[#allocation2 + $0x21] sm:$0xff] %vm172_vm0, %v229_v4 }
  0x29   : > { %265 = vst.msk [vmem:[#allocation2 + $0x49] sm:$0xff] %vm172_vm0, %v232_v5  ;;  %266 = vst.msk [vmem:[#allocation2 + $0x51] sm:$0xff] %vm172_vm0, %v233_v6 }
  0x2a   : > { %267 = vst.msk [vmem:[#allocation2 + $0x61] sm:$0xff] %vm172_vm0, %v234_v9  ;;  %268 = vst.msk [vmem:[#allocation2 + $0x69] sm:$0xff] %vm172_vm0, %v235_v11 }
  0x2b   : > { %269 = vst.msk [vmem:[#allocation2 + $0x79] sm:$0xff] %vm172_vm0, %v236_v12  ;;  %270 = vst.msk [vmem:[#allocation2 + $0x81] sm:$0xff] %vm172_vm0, %v237_v13 }
  0x2c   : > { %271 = vst.msk [vmem:[#allocation2 + $0x91] sm:$0xff] %vm172_vm0, %v238_v14  ;;  %272 = vst.msk [vmem:[#allocation2 + $0x99] sm:$0xff] %vm172_vm0, %v239_v15 }
  0x2d   : > { %273 = vst.msk [vmem:[#allocation2 + $0xa9] sm:$0xff] %vm172_vm0, %v240_v16  ;;  %274 = vst.msk [vmem:[#allocation2 + $0xb1] sm:$0xff] %vm172_vm0, %v241_v17 }
  0x2e   : > { %275 = vst.msk [vmem:[#allocation2 + $0xc1] sm:$0xff] %vm172_vm0, %v242_v18  ;;  %276 = vst.msk [vmem:[#allocation2 + $0xc9] sm:$0xff] %vm172_vm0, %v243_v19  ;;  %v329_v26 = vld [vmem:[#allocation2 + $0x31] sm:$0xff]  ;;  %v330_v27 = vld [vmem:[#allocation2 + $0x39] sm:$0xff] }
  0x2f   : > { %277 = vst.msk [vmem:[#allocation2 + $0xd9] sm:$0xff] %vm172_vm0, %v244_v20  ;;  %278 = vst.msk [vmem:[#allocation2 + $0xe1] sm:$0xff] %vm172_vm0, %v245_v21  ;;  %v327_v28 = vld [vmem:[#allocation2 + $0x19] sm:$0xff]  ;;  %v3131_v29 = vpack.i.bf16 %v330_v27, %v329_v26  ;;  %v328_v30 = vld [vmem:[#allocation2 + $0x21] sm:$0xff] }
  0x30   : > { %279 = vst.msk [vmem:[#allocation2 + $0xf1] sm:$0xff] %vm172_vm0, %v246_v22  ;;  %280 = vst.msk [vmem:[#allocation2 + $0xf9] sm:$0xff] %vm172_vm0, %v247_v23  ;;  %v331_v31 = vld [vmem:[#allocation2 + $0x49] sm:$0xff]  ;;  %v332_v32 = vld [vmem:[#allocation2 + $0x51] sm:$0xff]  ;;  %v3133_v33 = vpack.i.bf16 %v328_v30, %v327_v28 }
  0x31   : > { %281 = vst.msk [vmem:[#allocation2 + $0x109] sm:$0xff] %vm172_vm0, %v248_v24  ;;  %282 = vst.msk [vmem:[#allocation2 + $0x111] sm:$0xff] %vm172_vm0, %v249_v25  ;;  %v333_v34 = vld [vmem:[#allocation2 + $0x61] sm:$0xff]  ;;  %2331 = vrot.lane.b32.xlu1 %v3131_v29, %s2975_s19  ;;  %v3139_v37 = vpack.i.bf16 %v332_v32, %v331_v31  ;;  %v334_v38 = vld [vmem:[#allocation2 + $0x69] sm:$0xff] }
  0x32   : > { %283 = vst.msk [vmem:[#allocation2 + $0x121] sm:$0xff] %vm172_vm0, %v250_v35  ;;  %284 = vst.msk [vmem:[#allocation2 + $0x129] sm:$0xff] %vm172_vm0, %v251_v36  ;;  %2326 = vrot.lane.b32.xlu0 %v3133_v33, %s2975_s19  ;;  %v3145_v39 = vpack.i.bf16 %v334_v38, %v333_v34  ;;  %v335_v40 = vld [vmem:[#allocation2 + $0x79] sm:$0xff]  ;;  %v336_v41 = vld [vmem:[#allocation2 + $0x81] sm:$0xff] }
  0x33   : > { %v337_v42 = vld [vmem:[#allocation2 + $0x91] sm:$0xff]  ;;  %v338_v43 = vld [vmem:[#allocation2 + $0x99] sm:$0xff]  ;;  %v3157_v50 = vpack.i.bf16 %v336_v41, %v335_v40  ;;  %285 = vst.msk [vmem:[#allocation2 + $0x139] sm:$0xff] %vm172_vm0, %v252_v57  ;;  %286 = vst.msk [vmem:[#allocation2 + $0x141] sm:$0xff] %vm172_vm0, %v253_v58 }
  0x34   : > { %v339_v45 = vld [vmem:[#allocation2 + $0xa9] sm:$0xff]  ;;  %v340_v46 = vld [vmem:[#allocation2 + $0xb1] sm:$0xff]  ;;  %v3169_v56 = vpack.i.bf16 %v338_v43, %v337_v42  ;;  %287 = vst.msk [vmem:[#allocation2 + $0x151] sm:$0xff] %vm172_vm0, %v254_v59  ;;  %288 = vst.msk [vmem:[#allocation2 + $0x159] sm:$0xff] %vm172_vm0, %v255_v61 }
  0x35   : > { %v3147_v44 = vld [vmem:[#allocation2 + $0xc1] sm:$0xff]  ;;  %2336 = vrot.lane.b32.xlu1 %v3139_v37, %s2975_s19  ;;  %v342_v51 = vld [vmem:[#allocation2 + $0xc9] sm:$0xff]  ;;  %289 = vst.msk [vmem:[#allocation2 + $0x169] sm:$0xff] %vm172_vm0, %v256_v62  ;;  %290 = vst.msk [vmem:[#allocation2 + $0x171] sm:$0xff] %vm172_vm0, %v257_v63  ;;  %v3187_v0 = vpack.i.bf16 %v340_v46, %v339_v45 }
  0x36   : > { %v3149_v47 = vld [vmem:[#allocation2 + $0xd9] sm:$0xff]  ;;  %v3151_v48 = vld [vmem:[#allocation2 + $0xe1] sm:$0xff]  ;;  %2341 = vrot.lane.b32.xlu0 %v3145_v39, %s2975_s19  ;;  %v2360_v1 = vpack.i.bf16 %v342_v51, %v3147_v44  ;;  %v358_v20 = vld [vmem:[#allocation2 + $0xa] sm:$0xff] }
  0x37   : > { %v3153_v49 = vld [vmem:[#allocation2 + $0xf1] sm:$0xff]  ;;  %v3159_v52 = vld [vmem:[#allocation2 + $0xf9] sm:$0xff]  ;;  %v2365_v2 = vpack.i.bf16 %v3151_v48, %v3149_v47  ;;  %v357_v19 = vld [vmem:[#allocation2 + $0x2] sm:$0xff] }
  0x38   : > { %v3161_v53 = vld [vmem:[#allocation2 + $0x109] sm:$0xff]  ;;  %v3199_v3 = vpack.i.bf16 %v3159_v52, %v3153_v49  ;;  %v3201_v4 = vld [vmem:[#allocation2 + $0x111] sm:$0xff]  ;;  %v2400_v22 = vpack.i.bf16 %v358_v20, %v357_v19  ;;  %v359_v23 = vld [vmem:[#allocation2 + $0x1a] sm:$0xff] }
  0x39   : > { %2346 = vrot.lane.b32.xlu1 %v3157_v50, %s2975_s19  ;;  %v3203_v5 = vld [vmem:[#allocation2 + $0x121] sm:$0xff]  ;;  %v3205_v6 = vld [vmem:[#allocation2 + $0x129] sm:$0xff]  ;;  %v3212_v8 = vpack.i.bf16 %v3201_v4, %v3161_v53  ;;  %v361_v25 = vld [vmem:[#allocation2 + $0x32] sm:$0xff] }
  0x3a   : > { %2351 = vrot.lane.b32.xlu0 %v3169_v56, %s2975_s19  ;;  %v3218_v9 = vpack.i.bf16 %v3205_v6, %v3203_v5  ;;  %v3220_v10 = vld [vmem:[#allocation2 + $0x139] sm:$0xff]  ;;  %v352_v11 = vld [vmem:[#allocation2 + $0x141] sm:$0xff]  ;;  %v363_v30 = vld [vmem:[#allocation2 + $0x4a] sm:$0xff] }
  0x3b   : > { %v353_v12 = vld [vmem:[#allocation2 + $0x151] sm:$0xff]  ;;  %v354_v13 = vld [vmem:[#allocation2 + $0x159] sm:$0xff]  ;;  %v3227_v15 = vpack.i.bf16 %v352_v11, %v3220_v10  ;;  %v360_v24 = vld [vmem:[#allocation2 + $0x22] sm:$0xff] }
  0x3c   : > { %v2390_v16 = vpack.i.bf16 %v354_v13, %v353_v12  ;;  %v355_v17 = vld [vmem:[#allocation2 + $0x169] sm:$0xff]  ;;  %v356_v18 = vld [vmem:[#allocation2 + $0x171] sm:$0xff]  ;;  %v362_v26 = vld [vmem:[#allocation2 + $0x3a] sm:$0xff]  ;;  %v3235_v27 = vpack.i.bf16 %v360_v24, %v359_v23 }
  0x3d   : > { %2356 = vrot.lane.b32.xlu1 %v3187_v0, %s2975_s19  ;;  %v2395_v21 = vpack.i.bf16 %v356_v18, %v355_v17  ;;  %v3238_v28 = vpack.i.bf16 %v362_v26, %v361_v25  ;;  %v364_v31 = vld [vmem:[#allocation2 + $0x52] sm:$0xff]  ;;  %v365_v32 = vld [vmem:[#allocation2 + $0x62] sm:$0xff]  ;;  %v366_v34 = vld [vmem:[#allocation2 + $0x6a] sm:$0xff] }
  0x3e   : > { %2361 = vrot.lane.b32.xlu0 %v2360_v1, %s2975_s19  ;;  %v258_v35 = vld [vmem:[%s3084_s18 + $0xf0] sm:$0xff]  ;;  %v259_v36 = vld [vmem:[%s3084_s18 + $0xf8] sm:$0xff]  ;;  %v3246_v38 = vpack.i.bf16 %v364_v31, %v363_v30  ;;  %v3250_v40 = vpack.i.bf16 %v366_v34, %v365_v32  ;;  %v368_v42 = vld [vmem:[#allocation2 + $0x82] sm:$0xff] }
  0x3f   : > { %291 = vst.msk [vmem:[#allocation2 + $0x181] sm:$0xff] %vm172_vm0, %v258_v35  ;;  %292 = vst.msk [vmem:[#allocation2 + $0x189] sm:$0xff] %vm172_vm0, %v259_v36  ;;  %v367_v41 = vld [vmem:[#allocation2 + $0x7a] sm:$0xff]  ;;  %v369_v43 = vld [vmem:[#allocation2 + $0x92] sm:$0xff] }
  0x40   : > { %v370_v45 = vld [vmem:[#allocation2 + $0x9a] sm:$0xff]  ;;  %v3254_v46 = vpack.i.bf16 %v368_v42, %v367_v41  ;;  %v371_v57 = vld [vmem:[#allocation2 + $0xaa] sm:$0xff]  ;;  %v372_v58 = vld [vmem:[#allocation2 + $0xb2] sm:$0xff] }
  0x41   : > { %2366 = vrot.lane.b32.xlu1 %v2365_v2, %s2975_s19  ;;  %v2430_v51 = vpack.i.bf16 %v370_v45, %v369_v43  ;;  %v373_v59 = vld [vmem:[#allocation2 + $0xc2] sm:$0xff]  ;;  %v374_v61 = vld [vmem:[#allocation2 + $0xca] sm:$0xff]  ;;  %v2435_v62 = vpack.i.bf16 %v372_v58, %v371_v57  ;;  %v375_v1 = vld [vmem:[#allocation2 + $0xda] sm:$0xff] }
  0x42   : > { %2371 = vrot.lane.b32.xlu0 %v3199_v3, %s2975_s19  ;;  %v2440_v63 = vpack.i.bf16 %v374_v61, %v373_v59  ;;  %v376_v2 = vld [vmem:[#allocation2 + $0xe2] sm:$0xff]  ;;  %v377_v11 = vld [vmem:[#allocation2 + $0xf2] sm:$0xff]  ;;  %v378_v12 = vld [vmem:[#allocation2 + $0xfa] sm:$0xff] }
  0x43   : > { %v3262_v13 = vpack.i.bf16 %v376_v2, %v375_v1  ;;  %v379_v17 = vld [vmem:[#allocation2 + $0x10a] sm:$0xff]  ;;  %v380_v18 = vld [vmem:[#allocation2 + $0x112] sm:$0xff]  ;;  %v381_v19 = vld [vmem:[#allocation2 + $0x122] sm:$0xff] }
  0x44   : > { %v382_v20 = vld [vmem:[#allocation2 + $0x12a] sm:$0xff]  ;;  %v383_v23 = vld [vmem:[#allocation2 + $0x13a] sm:$0xff]  ;;  %v384_v24 = vld [vmem:[#allocation2 + $0x142] sm:$0xff] }
  0x45   : > { %2376 = vrot.lane.b32.xlu1 %v3212_v8, %s2975_s19  ;;  %v385_v25 = vld [vmem:[#allocation2 + $0x152] sm:$0xff]  ;;  %v386_v26 = vld [vmem:[#allocation2 + $0x15a] sm:$0xff]  ;;  %v3277_v30 = vpack.i.bf16 %v384_v24, %v383_v23  ;;  %v387_v32 = vld [vmem:[#allocation2 + $0x16a] sm:$0xff] }
  0x46   : > { %2381 = vrot.lane.b32.xlu0 %v3218_v9, %s2975_s19  ;;  %v2470_v31 = vpack.i.bf16 %v386_v26, %v385_v25  ;;  %v388_v34 = vld [vmem:[#allocation2 + $0x172] sm:$0xff]  ;;  %v3283_v36 = vld [vmem:[#allocation2 + $0x20] sm:$0xff]  ;;  %v3350_v25 = vld [vmem:[#allocation2 + $0xc8] sm:$0xff] }
  0x47   : > { %v3281_v35 = vld [vmem:[#allocation2 + $0x18] sm:$0xff]  ;;  %4404 = vst [vmem:[#allocation4_spill] sm:$0xff] %v3283_v36  ;;  %v2475_v41 = vpack.i.bf16 %v388_v34, %v387_v32  ;;  %v3290_v43 = vld [vmem:[#allocation2 + $0x30] sm:$0xff]  ;;  %v3308_v61 = vld [vmem:[#allocation2 + $0x60] sm:$0xff] }
  0x48   : > { %4403 = vst [vmem:[#allocation3_spill] sm:$0xff] %v3281_v35  ;;  %v2480_v42 = vpack.i.bf16 %v3283_v36, %v3281_v35  ;;  %v3292_v45 = vld [vmem:[#allocation2 + $0x38] sm:$0xff]  ;;  %v3296_v57 = vld [vmem:[#allocation2 + $0x50] sm:$0xff]  ;;  %v3314_v1 = vld [vmem:[#allocation2 + $0x80] sm:$0xff] }
  0x49   : > { %2386 = vrot.lane.b32.xlu1 %v3227_v15, %s2975_s19  ;;  %4406 = vst [vmem:[#allocation6_spill] sm:$0xff] %v3296_v57  ;;  %v3301_v58 = vpack.i.bf16 %v3292_v45, %v3290_v43  ;;  %v3348_v24 = vld [vmem:[#allocation2 + $0xc0] sm:$0xff]  ;;  %4408 = vst [vmem:[#allocation8_spill] sm:$0xff] %v3350_v25  ;;  %v3352_v26 = vld [vmem:[#allocation2 + $0xd8] sm:$0xff] }
  0x4a   : > { %2391 = vrot.lane.b32.xlu0 %v2390_v16, %s2975_s19  ;;  %v3265_v16 = vpack.i.bf16 %v378_v12, %v377_v11  ;;  %v3328_v12 = vld [vmem:[#allocation2 + $0x90] sm:$0xff]  ;;  %4407 = vst [vmem:[#allocation7_spill] sm:$0xff] %v3348_v24  ;;  %4409 = vst [vmem:[#allocation9_spill] sm:$0xff] %v3352_v26  ;;  %v2515_v32 = vpack.i.bf16 %v3350_v25, %v3348_v24  ;;  %v409_v14 = vld [vmem:[#allocation2 + $0x108] sm:$0xff] }
  0x4b   : > { %v410_v7 = vld [vmem:[#allocation2 + $0x110] sm:$0xff]  ;;  %v3368_v54 = vld [vmem:[#allocation2 + $0x120] sm:$0xff]  ;;  %v3370_v24 = vld [vmem:[#allocation2 + $0x128] sm:$0xff] }
  0x4c   : > { %v3366_v55 = vpack.i.bf16 %v410_v7, %v409_v14  ;;  %v3372_v25 = vld [vmem:[#allocation2 + $0x138] sm:$0xff]  ;;  %v3374_v36 = vld [vmem:[#allocation2 + $0x140] sm:$0xff]  ;;  %v3387_v14 = vld [vmem:[#allocation2 + $0x150] sm:$0xff] }
  0x4d   : > { %2396 = vrot.lane.b32.xlu1 %v2395_v21, %s2975_s19  ;;  %v3269_v21 = vpack.i.bf16 %v380_v18, %v379_v17  ;;  %v3330_v17 = vld [vmem:[#allocation2 + $0x98] sm:$0xff]  ;;  %v3332_v18 = vld [vmem:[#allocation2 + $0xa8] sm:$0xff]  ;;  %v3385_v7 = vpack.i.bf16 %v3374_v36, %v3372_v25  ;;  %v419_v35 = vld [vmem:[#allocation2 + $0x180] sm:$0xff] }
  0x4e   : > { %2401 = vrot.lane.b32.xlu0 %v2400_v22, %s2976_s20  ;;  %v3273_v22 = vpack.i.bf16 %v382_v20, %v381_v19  ;;  %v3334_v19 = vld [vmem:[#allocation2 + $0xb0] sm:$0xff]  ;;  %v3340_v20 = vpack.i.bf16 %v3330_v17, %v3328_v12 }
  0x4f   : > { %v3346_v23 = vpack.i.bf16 %v3334_v19, %v3332_v18 }
  0x51   : > { %2406 = vrot.lane.b32.xlu1 %v3235_v27, %s2976_s20 }
  0x52   : > { %2411 = vrot.lane.b32.xlu0 %v3238_v28, %s2976_s20 }
  0x55   : > { %2416 = vrot.lane.b32.xlu1 %v3246_v38, %s2976_s20 }
  0x56   : > { %2421 = vrot.lane.b32.xlu0 %v3250_v40, %s2976_s20 }
  0x59   : > { %2426 = vrot.lane.b32.xlu1 %v3254_v46, %s2976_s20 }
  0x5a   : > { %2431 = vrot.lane.b32.xlu0 %v2430_v51, %s2976_s20  ;;  %v3294_v51 = vld [vmem:[#allocation2 + $0x48] sm:$0xff] }
  0x5b   : > { %4405 = vst [vmem:[#allocation5_spill] sm:$0xff] %v3294_v51  ;;  %v3306_v59 = vpack.i.bf16 %v3296_v57, %v3294_v51  ;;  %v420_v51 = vld [vmem:[#allocation2 + $0x188] sm:$0xff] }
  0x5c   : > { %v2555_v57 = vpack.i.bf16 %v420_v51, %v419_v35  ;;  %v4412_v35 = vpack.i.bf16 %v3153_v49, %v3151_v48  ;;  %v2960_v49 = vld [vmem:[%s4378_s1 + $0x8] sm:$0x3f]  }
  0x5d   : > { %2436 = vrot.lane.b32.xlu1 %v2435_v62, %s2976_s20  ;;  %v3310_v62 = vld [vmem:[#allocation2 + $0x68] sm:$0xff] }
  0x5e   : > { %2441 = vrot.lane.b32.xlu0 %v2440_v63, %s2976_s20  ;;  %v3312_v63 = vld [vmem:[#allocation2 + $0x78] sm:$0xff]  ;;  %v3320_v2 = vpack.i.bf16 %v3310_v62, %v3308_v61 }
  0x5f   : > { %v3326_v11 = vpack.i.bf16 %v3314_v1, %v3312_v63 }
  0x61   : > { %2446 = vrot.lane.b32.xlu1 %v3262_v13, %s2976_s20 }
  0x62   : > { %2451 = vrot.lane.b32.xlu0 %v3265_v16, %s2976_s20 }
  0x65   : > { %2456 = vrot.lane.b32.xlu1 %v3269_v21, %s2976_s20 }
  0x66   : > { %2461 = vrot.lane.b32.xlu0 %v3273_v22, %s2976_s20 }
  0x69   : > { %2466 = vrot.lane.b32.xlu1 %v3277_v30, %s2976_s20 }
  0x6a   : > { %2471 = vrot.lane.b32.xlu0 %v2470_v31, %s2976_s20  ;;  %v3354_v31 = vld [vmem:[#allocation2 + $0xe0] sm:$0xff] }
  0x6b   : > { %4410 = vst [vmem:[#allocation10_spill] sm:$0xff] %v3354_v31  ;;  %v2520_v34 = vpack.i.bf16 %v3354_v31, %v3352_v26  ;;  %v3379_v26 = vpack.i.bf16 %v3370_v24, %v3368_v54 }
  0x6d   : > { %2476 = vrot.lane.b32.xlu1 %v2475_v41, %s2976_s20  ;;  %v407_v41 = vld [vmem:[#allocation2 + $0xf0] sm:$0xff] }
  0x6e   : > { %2481 = vrot.lane.b32.xlu0 %v2480_v42, %s2977_s21  ;;  %v408_v42 = vld [vmem:[#allocation2 + $0xf8] sm:$0xff] }
  0x6f   : > { %v2525_v60 = vpack.i.bf16 %v408_v42, %v407_v41  ;;  %v3393_v41 = vld [vmem:[#allocation2 + $0x170] sm:$0xff] }
  0x71   : > { %2486 = vrot.lane.b32.xlu1 %v3301_v58, %s2977_s21 }
  0x72   : > { %2491 = vrot.lane.b32.xlu0 %v3306_v59, %s2977_s21 }
  0x75   : > { %2496 = vrot.lane.b32.xlu1 %v3320_v2, %s2977_s21 }
  0x76   : > { %2501 = vrot.lane.b32.xlu0 %v3326_v11, %s2977_s21 }
  0x79   : > { %2506 = vrot.lane.b32.xlu1 %v3340_v20, %s2977_s21 }
  0x7a   : > { %2511 = vrot.lane.b32.xlu0 %v3346_v23, %s2977_s21 }
  0x7d   : > { %2516 = vrot.lane.b32.xlu1 %v2515_v32, %s2977_s21  ;;  %v3389_v32 = vld [vmem:[#allocation2 + $0x158] sm:$0xff] }
  0x7e   : > { %2521 = vrot.lane.b32.xlu0 %v2520_v34, %s2977_s21  ;;  %v3391_v34 = vld [vmem:[#allocation2 + $0x168] sm:$0xff]  ;;  %v3399_v42 = vpack.i.bf16 %v3389_v32, %v3387_v14 }
  0x7f   : > { %v3405_v31 = vpack.i.bf16 %v3393_v41, %v3391_v34 }
  0x81   : > { %2526 = vrot.lane.b32.xlu1 %v2525_v60, %s2977_s21 }
  0x82   : > { %2531 = vrot.lane.b32.xlu0 %v3366_v55, %s2977_s21 }
  0x85   : > { %2536 = vrot.lane.b32.xlu1 %v3379_v26, %s2977_s21 }
  0x86   : > { %2541 = vrot.lane.b32.xlu0 %v3385_v7, %s2977_s21 }
  0x89   : > { %2546 = vrot.lane.b32.xlu1 %v3399_v42, %s2977_s21 }
  0x8a   : > { %2551 = vrot.lane.b32.xlu0 %v3405_v31, %s2977_s21 }
  0x8d   : > { %2556 = vrot.lane.b32.xlu1 %v2555_v57, %s2977_s21 }
  0x8e   : > { %2561 = vrot.lane.b32.xlu0 %v3133_v33, %s2978_s22  ;;  %v4411_v33 = vpack.i.bf16 %v3149_v47, %v3147_v44 }
  0x91   : > { %2566 = vrot.lane.b32.xlu1 %v3131_v29, %s2978_s22 }
  0x92   : > { %2571 = vrot.lane.b32.xlu0 %v3139_v37, %s2978_s22 }
  0x95   : > { %2576 = vrot.lane.b32.xlu1 %v3145_v39, %s2978_s22  ;;  %v3434_v39 = vpop.permute.xlu0 %2321 }
  0x96   : > { %2581 = vrot.lane.b32.xlu0 %v3157_v50, %s2978_s22  ;;  %v4413_v50 = vpack.i.bf16 %v3161_v53, %v3159_v52  ;;  %v2981_v52 = vmov 65535  }
  0x97   : > { %v1958_v53 = vsel %vm1956_vm2, 4294967295, %v2981_v52 }
  0x99   : > { %2586 = vrot.lane.b32.xlu1 %v3169_v56, %s2978_s22 }
  0x9a   : > { %2591 = vrot.lane.b32.xlu0 %v3187_v0, %s2978_s22 }
  0x9d   : > { %2596 = vrot.lane.b32.xlu1 %v4411_v33, %s2978_s22  ;;  %v2961_v33 = vld [vmem:[%s4378_s1] sm:$0xff]  }
  0x9e   : > { %2601 = vrot.lane.b32.xlu0 %v4412_v35, %s2978_s22 }
  0xa1   : > { %2606 = vrot.lane.b32.xlu1 %v4413_v50, %s2978_s22 }
  0xa2   : > { %2611 = vrot.lane.b32.xlu0 %v3235_v27, %s2979_s23  ;;  %v1959_v27 = vsel %vm1957_vm3, %v1958_v53, 0 }
  0xa3   : > { %v3442_v56 = vpop.permute.xlu1 %2331  ;;  %v1961_v51 = vand.u32 %v2960_v49, %v1959_v27 }
  0xa4   : > { %v3444_v44 = vpop.permute.xlu0 %2326 }
  0xa5   : > { %4414 = vst [vmem:[#allocation11_spill] sm:$0xff] %v3444_v44  ;;  %2616 = vrot.lane.b32.xlu1 %v3262_v13, %s2979_s23  ;;  %2262 = vmatprep.subr.bf16.mxu0 %v1961_v51 }
  0xa6   : > { %2621 = vrot.lane.b32.xlu0 %v3238_v28, %s2979_s23  ;;  %2263 = vmatpush3.bf16.msra.mxu0 %v1961_v51 }
  0xa7   : > { %v3450_v47 = vpop.permute.xlu1 %2336  ;;  %2298 = vmatprep.subr.bf16.mxu1 %v1961_v51  ;;  %2264 = vmatprep.subr.bf16.mxu0 %v2961_v33 }
  0xa8   : > { %v3452_v48 = vpop.permute.xlu0 %2341  ;;  %2300 = vmatpush3.bf16.msra.mxu1 %v1961_v51 }
  0xa9   : > { %2626 = vrot.lane.b32.xlu1 %v3265_v16, %s2979_s23  ;;  %2299 = vmatprep.subr.bf16.mxu1 %v2961_v33 }
  0xaa   : > { %2631 = vrot.lane.b32.xlu0 %v3301_v58, %s2980_s24  ;;  %2265 = vmatpush3.bf16.msra.mxu0 %v2961_v33 }
  0xab   : > { %v3461_v0 = vpop.permute.xlu1 %2346 }
  0xac   : > { %v3463_v13 = vpop.permute.xlu0 %2351  ;;  %2301 = vmatpush3.bf16.msra.mxu1 %v2961_v33  ;;  %v524_v33 = vld [vmem:[#allocation2 + $0x79] sm:$0xff] }
  0xad   : > { %2636 = vrot.lane.b32.xlu1 %v2525_v60, %s2980_s24 }
  0xae   : > { %2641 = vrot.lane.b32.xlu0 %v3306_v59, %s2980_s24 }
  0xaf   : > { %v3468_v57 = vpop.permute.xlu1 %2356 }
  0xb0   : > { %v3470_v58 = vpop.permute.xlu0 %2361 }
  0xb1   : > { %4415 = vst [vmem:[#allocation12_spill] sm:$0xff] %v3470_v58  ;;  %2646 = vrot.lane.b32.xlu1 %v3366_v55, %s2980_s24 }
  0xb2   : > { %2651 = vrot.lane.b32.xlu0 %v3131_v29, %s2982_s29 }
  0xb3   : > { %v3479_v60 = vpop.permute.xlu1 %2366 }
  0xb4   : > { %4416 = vst [vmem:[#allocation13_spill] sm:$0xff] %v3479_v60  ;;  %v3481_v59 = vpop.permute.xlu0 %2371 }
  0xb5   : > { %4417 = vst [vmem:[#allocation14_spill] sm:$0xff] %v3481_v59  ;;  %2656 = vrot.lane.b32.xlu1 %v3199_v3, %s2982_s29 }
  0xb6   : > { %2661 = vrot.lane.b32.xlu0 %v3139_v37, %s2982_s29 }
  0xb7   : > { %v3487_v35 = vpop.permute.xlu1 %2376 }
  0xb8   : > { %4418 = vst [vmem:[#allocation15_spill] sm:$0xff] %v3487_v35  ;;  %v3489_v55 = vpop.permute.xlu0 %2381 }
  0xb9   : > { %2666 = vrot.lane.b32.xlu1 %v3212_v8, %s2982_s29  ;;  %v4420_v8 = vpack.i.bf16 %v3203_v5, %v3201_v4 }
  0xba   : > { %2671 = vrot.lane.b32.xlu0 %v3238_v28, %s2983_s30 }
  0xbb   : > { %v3495_v29 = vpop.permute.xlu1 %2386 }
  0xbc   : > { %v2392_v50 = vpop.permute.xlu0 %2391 }
  0xbd   : > { %2676 = vrot.lane.b32.xlu1 %v3265_v16, %s2983_s30  ;;  %v4422_v16 = vpack.i.bf16 %v3220_v10, %v3205_v6  ;;  %v522_v10 = vld [vmem:[#allocation2 + $0x61] sm:$0xff] }
  0xbe   : > { %2681 = vrot.lane.b32.xlu0 %v3246_v38, %s2983_s30 }
  0xbf   : > { %v2397_v37 = vpop.permute.xlu1 %2396 }
  0xc0   : > { %v3501_v3 = vpop.permute.xlu0 %2401 }
  0xc1   : > { %4419 = vst [vmem:[#allocation16_spill] sm:$0xff] %v3501_v3  ;;  %2686 = vrot.lane.b32.xlu1 %v3269_v21, %s2983_s30 }
  0xc2   : > { %2691 = vrot.lane.b32.xlu0 %v4420_v8, %s2978_s22  ;;  %v525_v8 = vld [vmem:[#allocation2 + $0x81] sm:$0xff] }
  0xc3   : > { %v3509_v28 = vpop.permute.xlu1 %2406 }
  0xc4   : > { %4421 = vst [vmem:[#allocation17_spill] sm:$0xff] %v3509_v28  ;;  %v3511_v49 = vpop.permute.xlu0 %2411 }
  0xc5   : > { %2696 = vrot.lane.b32.xlu1 %v4422_v16, %s2978_s22 }
  0xc6   : > { %2701 = vrot.lane.b32.xlu0 %v3246_v38, %s2979_s23  ;;  %v523_v38 = vld [vmem:[#allocation2 + $0x69] sm:$0xff] }
  0xc7   : > { %v3519_v52 = vpop.permute.xlu1 %2416 }
  0xc8   : > { %v3521_v53 = vpop.permute.xlu0 %2421 }
  0xc9   : > { %2706 = vrot.lane.b32.xlu1 %v3269_v21, %s2979_s23  ;;  %v2740_v21 = vpack.i.bf16 %v523_v38, %v522_v10 }
  0xca   : > { %2711 = vrot.lane.b32.xlu0 %v3250_v40, %s2979_s23 }
  0xcb   : > { %v3527_v4 = vpop.permute.xlu1 %2426 }
  0xcc   : > { %v3529_v5 = vpop.permute.xlu0 %2431 }
  0xcd   : > { %2716 = vrot.lane.b32.xlu1 %v3273_v22, %s2979_s23 }
  0xce   : > { %2721 = vrot.lane.b32.xlu0 %v3320_v2, %s2980_s24  ;;  %v2750_v2 = vpack.i.bf16 %v525_v8, %v524_v33  ;;  %v446_v8 = vld [vmem:[#allocation2 + $0x141] sm:$0xff] }
  0xcf   : > { %v3535_v6 = vpop.permute.xlu1 %2436 }
  0xd0   : > { %v3537_v27 = vpop.permute.xlu0 %2441 }
  0xd1   : > { %4423 = vst [vmem:[#allocation18_spill] sm:$0xff] %v3537_v27  ;;  %2726 = vrot.lane.b32.xlu1 %v3379_v26, %s2980_s24  ;;  %v2393_v26 = vunpack.i.l.bf16 %v2392_v50 }
  0xd2   : > { %2731 = vrot.lane.b32.xlu0 %v3326_v11, %s2980_s24  ;;  %v2394_v11 = vunpack.i.h.bf16 %v2392_v50 }
  0xd3   : > { %v3543_v51 = vpop.permute.xlu1 %2446 }
  0xd4   : > { %4424 = vst [vmem:[#allocation19_spill] sm:$0xff] %v3543_v51  ;;  %v3545_v16 = vpop.permute.xlu0 %2451  ;;  %v2398_v51 = vunpack.i.l.bf16 %v2397_v37 }
  0xd5   : > { %4425 = vst [vmem:[#allocation20_spill] sm:$0xff] %v3545_v16  ;;  %2736 = vrot.lane.b32.xlu1 %v3385_v7, %s2980_s24  ;;  %v2399_v16 = vunpack.i.h.bf16 %v2397_v37 }
  0xd6   : > { %2741 = vrot.lane.b32.xlu0 %v2740_v21, %s2982_s29  ;;  %v1635_v21 = vsel %vm172_vm0, %v3389_v32, %v2394_v11 }
  0xd7   : > { %v3550_v35 = vpop.permute.xlu1 %2456 }
  0xd8   : > { %4426 = vst [vmem:[#allocation21_spill] sm:$0xff] %v3550_v35  ;;  %v3552_v59 = vpop.permute.xlu0 %2461  ;;  %v2353_v35 = vunpack.i.l.bf16 %v3463_v13 }
  0xd9   : > { %2746 = vrot.lane.b32.xlu1 %v3218_v9, %s2982_s29  ;;  %v1634_v9 = vsel %vm172_vm0, %v3387_v14, %v2393_v26  ;;  %v1637_v14 = vsel %vm172_vm0, %v3393_v41, %v2399_v16  ;;  %v3594_v41 = vld [vmem:[#allocation2 + $0x169] sm:$0xff]  ;;  %v461_v16 = vld [vmem:[#allocation2 + $0x7a] sm:$0xff] }
  0xda   : > { %2751 = vrot.lane.b32.xlu0 %v2750_v2, %s2982_s29  ;;  %v3573_v2 = vld [vmem:[#allocation2 + $0x151] sm:$0xff] }
  0xdb   : > { %v3557_v10 = vpop.permute.xlu1 %2466  ;;  %v2780_v26 = vpack.i.bf16 %v3573_v2, %v446_v8  ;;  %v464_v8 = vld [vmem:[#allocation2 + $0x9a] sm:$0xff] }
  0xdc   : > { %v2472_v38 = vpop.permute.xlu0 %2471 }
  0xdd   : > { %v2474_v7 = vunpack.i.h.bf16 %v2472_v38  ;;  %v2473_v27 = vunpack.i.l.bf16 %v2472_v38  ;;  %2756 = vrot.lane.b32.xlu1 %v3227_v15, %s2982_s29 }
  0xde   : > { %2761 = vrot.lane.b32.xlu0 %v3250_v40, %s2983_s30  ;;  %v1636_v40 = vsel %vm172_vm0, %v3391_v34, %v2398_v51  ;;  %v2344_v34 = vunpack.i.h.bf16 %v3452_v48  ;;  %v2343_v51 = vunpack.i.l.bf16 %v3452_v48 }
  0xdf   : > { %v3568_v50 = vsel %vm1638_vm4, %v1634_v9, %v2473_v27  ;;  %v3571_v37 = vsel %vm1638_vm4, %v1635_v21, %v2474_v7  ;;  %v2477_v33 = vpop.permute.xlu1 %2476  ;;  %v3592_v7 = vld [vmem:[#allocation2 + $0x159] sm:$0xff]  ;;  %v462_v21 = vld [vmem:[#allocation2 + $0x82] sm:$0xff] }
  0xe0   : > { %v2479_v15 = vunpack.i.h.bf16 %v2477_v33  ;;  %v2478_v38 = vunpack.i.l.bf16 %v2477_v33  ;;  %v3575_v32 = vpop.permute.xlu0 %2481  ;;  %v463_v9 = vld [vmem:[#allocation2 + $0x92] sm:$0xff]  ;;  %v2349_v33 = vunpack.i.h.bf16 %v3461_v0  ;;  %v2785_v48 = vpack.i.bf16 %v3594_v41, %v3592_v7 }
  0xe1   : > { %4427 = vst [vmem:[#allocation22_spill] sm:$0xff] %v3575_v32  ;;  %2766 = vrot.lane.b32.xlu1 %v3273_v22, %s2983_s30  ;;  %v2423_v32 = vunpack.i.l.bf16 %v3521_v53  ;;  %v1615_v28 = vsel %vm172_vm0, %v3310_v62, %v2344_v34  ;;  %v3619_v60 = vpack.i.bf16 %v464_v8, %v463_v9  ;;  %v1618_v34 = vsel %vm172_vm0, %v3328_v12, %v2353_v35 }
  0xe2   : > { %v3584_v27 = vsel %vm1638_vm4, %v1637_v14, %v2479_v15  ;;  %v3587_v11 = vsel %vm1638_vm4, %v1636_v40, %v2478_v38  ;;  %2771 = vrot.lane.b32.xlu0 %v3254_v46, %s2983_s30  ;;  %v2348_v15 = vunpack.i.l.bf16 %v3461_v0  ;;  %v479_v38 = vld [vmem:[#allocation2 + $0x152] sm:$0xff]  ;;  %v480_v14 = vld [vmem:[#allocation2 + $0x15a] sm:$0xff]  ;;  %v2354_v40 = vunpack.i.h.bf16 %v3463_v13 }
  0xe3   : > { %v3598_v22 = vpop.permute.xlu1 %2486  ;;  %v2790_v0 = vpack.i.bf16 %v462_v21, %v461_v16  ;;  %v1614_v13 = vsel %vm172_vm0, %v3308_v61, %v2343_v51  ;;  %v3621_v58 = vpack.i.bf16 %v480_v14, %v479_v38  ;;  %v1617_v44 = vsel %vm172_vm0, %v3314_v1, %v2349_v33 }
  0xe4   : > { %4428 = vst [vmem:[#allocation23_spill] sm:$0xff] %v3598_v22  ;;  %v3602_v46 = vpop.permute.xlu0 %2491  ;;  %v2424_v22 = vunpack.i.h.bf16 %v3521_v53  ;;  %v1616_v53 = vsel %vm172_vm0, %v3312_v63, %v2348_v15  ;;  %v2428_v16 = vunpack.i.l.bf16 %v3527_v4  ;;  %v1619_v61 = vsel %vm172_vm0, %v3330_v17, %v2354_v40 }
  0xe5   : > { %2776 = vrot.lane.b32.xlu1 %v3277_v30, %s2983_s30  ;;  %v1647_v1 = vsel %vm1638_vm4, %v1614_v13, %v2423_v32  ;;  %v2434_v63 = vunpack.i.h.bf16 %v3529_v5  ;;  %v2433_v33 = vunpack.i.l.bf16 %v3529_v5  ;;  %v2358_v17 = vunpack.i.l.bf16 %v3468_v57 }
  0xe6   : > { %2781 = vrot.lane.b32.xlu0 %v2780_v26, %s2978_s22  ;;  %v2429_v26 = vunpack.i.h.bf16 %v3527_v4  ;;  %v1648_v9 = vsel %vm1638_vm4, %v1615_v28, %v2424_v22  ;;  %v2359_v4 = vunpack.i.h.bf16 %v3468_v57  ;;  %v1649_v28 = vsel %vm1638_vm4, %v1616_v53, %v2428_v16 }
  0xe7   : > { %v3617_v3 = vpop.permute.xlu1 %2496  ;;  %v2439_v38 = vunpack.i.h.bf16 %v3535_v6  ;;  %v2438_v14 = vunpack.i.l.bf16 %v3535_v6  ;;  %v1620_v16 = vsel %vm172_vm0, %v3332_v18, %v2358_v17 }
  0xe8   : > { %v2502_v62 = vpop.permute.xlu0 %2501  ;;  %v1650_v32 = vsel %vm1638_vm4, %v1617_v44, %v2429_v26  ;;  %v1621_v26 = vsel %vm172_vm0, %v3334_v19, %v2359_v4  ;;  %v526_v19 = vld [vmem:[#allocation2 + $0x91] sm:$0xff]  ;;  %v2383_v4 = vunpack.i.l.bf16 %v3489_v55 }
  0xe9   : > { %v2504_v51 = vunpack.i.h.bf16 %v2502_v62  ;;  %v2503_v21 = vunpack.i.l.bf16 %v2502_v62  ;;  %2786 = vrot.lane.b32.xlu1 %v2785_v48, %s2978_s22  ;;  %v1651_v48 = vsel %vm1638_vm4, %v1618_v34, %v2433_v33  ;;  %v2384_v33 = vunpack.i.h.bf16 %v3489_v55  ;;  %v529_v55 = vld [vmem:[#allocation2 + $0xb1] sm:$0xff] }
  0xea   : > { %2791 = vrot.lane.b32.xlu0 %v2790_v0, %s2979_s23  ;;  %v1652_v0 = vsel %vm1638_vm4, %v1619_v61, %v2434_v63  ;;  %v527_v63 = vld [vmem:[#allocation2 + $0x99] sm:$0xff] }
  0xeb   : > { %v3642_v12 = vsel %vm1671_vm5, %v1647_v1, %v2503_v21  ;;  %v3645_v35 = vsel %vm1671_vm5, %v1648_v9, %v2504_v51  ;;  %v2507_v15 = vpop.permute.xlu1 %2506  ;;  %v1654_v51 = vsel %vm1638_vm4, %v1621_v26, %v2439_v38  ;;  %v1653_v21 = vsel %vm1638_vm4, %v1620_v16, %v2438_v14 }
  0xec   : > { %v2509_v22 = vunpack.i.h.bf16 %v2507_v15  ;;  %v2508_v8 = vunpack.i.l.bf16 %v2507_v15  ;;  %v2512_v5 = vpop.permute.xlu0 %2511  ;;  %v2464_v15 = vunpack.i.h.bf16 %v3552_v59  ;;  %v2389_v38 = vunpack.i.h.bf16 %v3495_v29 }
  0xed   : > { %v2514_v40 = vunpack.i.h.bf16 %v2512_v5  ;;  %v2513_v57 = vunpack.i.l.bf16 %v2512_v5  ;;  %2796 = vrot.lane.b32.xlu1 %v3277_v30, %s2979_s23  ;;  %v1631_v5 = vsel %vm172_vm0, %v3370_v24, %v2384_v33  ;;  %v560_v33 = vld [vmem:[#allocation2 + $0xaa] sm:$0xff] }
  0xee   : > { %v3656_v44 = vsel %vm1671_vm5, %v1649_v28, %v2508_v8  ;;  %v3659_v13 = vsel %vm1671_vm5, %v1650_v32, %v2509_v22  ;;  %2801 = vrot.lane.b32.xlu0 %v3619_v60, %s2979_s23  ;;  %v2463_v32 = vunpack.i.l.bf16 %v3552_v59  ;;  %v2835_v22 = vpack.i.bf16 %v3592_v7, %v3573_v2  ;;  %v528_v8 = vld [vmem:[#allocation2 + $0xa9] sm:$0xff] }
  0xef   : > { %v3664_v6 = vsel %vm1671_vm5, %v1651_v48, %v2513_v57  ;;  %v3667_v53 = vsel %vm1671_vm5, %v1652_v0, %v2514_v40  ;;  %v2517_v30 = vpop.permute.xlu1 %2516  ;;  %v2388_v59 = vunpack.i.l.bf16 %v3495_v29  ;;  %v2469_v40 = vunpack.i.h.bf16 %v3557_v10 }
  0xf0   : > { %v2519_v62 = vunpack.i.h.bf16 %v2517_v30  ;;  %v2518_v61 = vunpack.i.l.bf16 %v2517_v30  ;;  %v3673_v34 = vpop.permute.xlu0 %2521  ;;  %v2468_v57 = vunpack.i.l.bf16 %v3557_v10  ;;  %v2840_v48 = vpack.i.bf16 %v529_v55, %v528_v8 }
  0xf1   : > { %2806 = vrot.lane.b32.xlu1 %v3621_v58, %s2979_s23  ;;  %v1632_v26 = vsel %vm172_vm0, %v3372_v25, %v2388_v59  ;;  %v561_v25 = vld [vmem:[#allocation2 + $0xb2] sm:$0xff] }
  0xf2   : > { %v3680_v1 = vsel %vm1671_vm5, %v1653_v21, %v2518_v61  ;;  %v3683_v9 = vsel %vm1671_vm5, %v1654_v51, %v2519_v62  ;;  %2811 = vrot.lane.b32.xlu0 %v3340_v20, %s2980_s24  ;;  %v2830_v20 = vpack.i.bf16 %v527_v63, %v526_v19  ;;  %v1665_v21 = vsel %vm1638_vm4, %v1632_v26, %v2468_v57 }
  0xf3   : > { %4429 = vst [vmem:[#allocation24_spill] sm:$0xff] %v3683_v9  ;;  %v3687_v18 = vpop.permute.xlu1 %2526  ;;  %v2498_v26 = vunpack.i.l.bf16 %v3617_v3  ;;  %v4452_v9 = vld [vmem:[#allocation19_spill] sm:$0xff] }
  0xf4   : > { %v3691_v17 = vpop.permute.xlu0 %2531 }
  0xf5   : > { %2816 = vrot.lane.b32.xlu1 %v3399_v42, %s2980_s24  ;;  %v1630_v42 = vsel %vm172_vm0, %v3368_v54, %v2383_v4  ;;  %v1664_v54 = vsel %vm1638_vm4, %v1631_v5, %v2464_v15  ;;  %v576_v4 = vld [vmem:[#allocation2 + $0x16a] sm:$0xff]  ;;  %v577_v15 = vld [vmem:[#allocation2 + $0x172] sm:$0xff]  ;;  %v2414_v5 = vunpack.i.h.bf16 %v3511_v49 }
  0xf6   : > { %2821 = vrot.lane.b32.xlu0 %v3346_v23, %s2980_s24  ;;  %v3709_v23 = vld [vmem:[#allocation2 + $0x171] sm:$0xff]  ;;  %v1663_v24 = vsel %vm1638_vm4, %v1630_v42, %v2463_v32  ;;  %v2334_v32 = vunpack.i.h.bf16 %v3442_v56  ;;  %v2413_v42 = vunpack.i.l.bf16 %v3511_v49 }
  0xf7   : > { %v3699_v28 = vpop.permute.xlu1 %2536  ;;  %v2845_v10 = vpack.i.bf16 %v3709_v23, %v3594_v41 }
  0xf8   : > { %v2542_v14 = vpop.permute.xlu0 %2541 }
  0xf9   : > { %v2544_v2 = vunpack.i.h.bf16 %v2542_v14  ;;  %v2543_v7 = vunpack.i.l.bf16 %v2542_v14  ;;  %2826 = vrot.lane.b32.xlu1 %v3405_v31, %s2980_s24  ;;  %v1633_v31 = vsel %vm172_vm0, %v3374_v36, %v2389_v38 }
  0xfa   : > { %2831 = vrot.lane.b32.xlu0 %v2830_v20, %s2982_s29  ;;  %v1666_v51 = vsel %vm1638_vm4, %v1633_v31, %v2469_v40  ;;  %v2333_v20 = vunpack.i.l.bf16 %v3442_v56  ;;  %v2860_v56 = vpack.i.bf16 %v561_v25, %v560_v33  ;;  %v3755_v40 = vpack.i.bf16 %v577_v15, %v576_v4 }
  0xfb   : > { %v3719_v29 = vsel %vm1671_vm5, %v1663_v24, %v2543_v7  ;;  %v3722_v0 = vsel %vm1671_vm5, %v1664_v54, %v2544_v2  ;;  %v2547_v30 = vpop.permute.xlu1 %2546  ;;  %v1611_v7 = vsel %vm172_vm0, %v3292_v45, %v2334_v32  ;;  %v2339_v24 = vunpack.i.h.bf16 %v3450_v47 }
  0xfc   : > { %v2549_v16 = vunpack.i.h.bf16 %v2547_v30  ;;  %v2548_v62 = vunpack.i.l.bf16 %v2547_v30  ;;  %v2552_v61 = vpop.permute.xlu0 %2551  ;;  %v1610_v2 = vsel %vm172_vm0, %v3290_v43, %v2333_v20  ;;  %v1644_v30 = vsel %vm1638_vm4, %v1611_v7, %v2414_v5 }
  0xfd   : > { %v2554_v19 = vunpack.i.h.bf16 %v2552_v61  ;;  %v2553_v63 = vunpack.i.l.bf16 %v2552_v61  ;;  %2836 = vrot.lane.b32.xlu1 %v2835_v22, %s2982_s29  ;;  %v2418_v43 = vunpack.i.l.bf16 %v3519_v52  ;;  %v2499_v45 = vunpack.i.h.bf16 %v3617_v3  ;;  %v4435_v3 = vld [vmem:[#allocation5_spill] sm:$0xff] }
  0xfe   : > { %v3734_v41 = vsel %vm1671_vm5, %v1665_v21, %v2548_v62  ;;  %v3737_v36 = vsel %vm1671_vm5, %v1666_v51, %v2549_v16  ;;  %2841 = vrot.lane.b32.xlu0 %v2840_v48, %s2982_s29  ;;  %v451_v48 = vld [vmem:[#allocation2 + $0x181] sm:$0xff] }
  0xff   : > { %v3744_v8 = vsel %vm1671_vm5, %v3568_v50, %v2553_v63  ;;  %v3748_v22 = vsel %vm1671_vm5, %v3571_v37, %v2554_v19  ;;  %v2557_v55 = vpop.permute.xlu1 %2556  ;;  %v2494_v50 = vunpack.i.h.bf16 %v3602_v46  ;;  %v2493_v37 = vunpack.i.l.bf16 %v3602_v46  ;;  %v4434_v21 = vld [vmem:[#allocation6_spill] sm:$0xff] }
 0x100   : > { %4430 = vst [vmem:[#allocation25_spill] sm:$0xff] %v3744_v8  ;;  %4431 = vst [vmem:[#allocation26_spill] sm:$0xff] %v3748_v22  ;;  %v2559_v38 = vunpack.i.h.bf16 %v2557_v55  ;;  %v2558_v59 = vunpack.i.l.bf16 %v2557_v55  ;;  %v3752_v14 = vpop.permute.xlu0 %2561  ;;  %v2338_v46 = vunpack.i.l.bf16 %v3450_v47  ;;  %v1613_v19 = vsel %vm172_vm0, %v4434_v21, %v2339_v24  ;;  %v467_v24 = vld [vmem:[#allocation2 + $0xc2] sm:$0xff] }
 0x101   : > { %2846 = vrot.lane.b32.xlu1 %v2845_v10, %s2982_s29  ;;  %v2419_v10 = vunpack.i.h.bf16 %v3519_v52  ;;  %v1677_v61 = vsel %vm1671_vm5, %v1644_v30, %v2494_v50  ;;  %v515_v21 = vld [vmem:[#allocation2 + $0x188] sm:$0xff]  ;;  %v2449_v8 = vunpack.i.h.bf16 %v4452_v9 }
 0x102   : > { %v3761_v57 = vsel %vm1671_vm5, %v3587_v11, %v2558_v59  ;;  %v3765_v49 = vsel %vm1671_vm5, %v3584_v27, %v2559_v38  ;;  %2851 = vrot.lane.b32.xlu0 %v3619_v60, %s2983_s30  ;;  %v3777_v11 = vld [vmem:[#allocation2 + $0xc9] sm:$0xff]  ;;  %v1643_v60 = vsel %vm1638_vm4, %v1610_v2, %v2413_v42  ;;  %v1612_v63 = vsel %vm172_vm0, %v4435_v3, %v2338_v46 }
 0x103   : > { %4432 = vst [vmem:[#allocation27_spill] sm:$0xff] %v3761_v57  ;;  %4433 = vst [vmem:[#allocation28_spill] sm:$0xff] %v3765_v49  ;;  %v3775_v54 = vpop.permute.xlu1 %2566  ;;  %v452_v27 = vld [vmem:[#allocation2 + $0x189] sm:$0xff]  ;;  %v1676_v62 = vsel %vm1671_vm5, %v1643_v60, %v2493_v37  ;;  %v2870_v51 = vpack.i.bf16 %v3777_v11, %v3709_v23  ;;  %v1646_v4 = vsel %vm1638_vm4, %v1613_v19, %v2419_v10  ;;  %v500_v19 = vld [vmem:[#allocation2 + $0xd8] sm:$0xff]  ;;  %v2324_v3 = vunpack.i.h.bf16 %v3434_v39 }
 0x104   : > { %v2572_v31 = vpop.permute.xlu0 %2571  ;;  %v3792_v52 = vpack.i.bf16 %v452_v27, %v451_v48  ;;  %v1645_v15 = vsel %vm1638_vm4, %v1612_v63, %v2418_v43  ;;  %v1679_v5 = vsel %vm1671_vm5, %v1646_v4, %v2499_v45  ;;  %v468_v46 = vld [vmem:[#allocation2 + $0xca] sm:$0xff]  ;;  %v501_v63 = vld [vmem:[#allocation2 + $0xe0] sm:$0xff] }
 0x105   : > { %v2574_v47 = vunpack.i.h.bf16 %v2572_v31  ;;  %v2573_v16 = vunpack.i.l.bf16 %v2572_v31  ;;  %2856 = vrot.lane.b32.xlu1 %v3621_v58, %s2983_s30  ;;  %v1678_v55 = vsel %vm1671_vm5, %v1645_v15, %v2498_v26  ;;  %v483_v31 = vld [vmem:[#allocation2 + $0x182] sm:$0xff]  ;;  %v484_v45 = vld [vmem:[#allocation2 + $0x18a] sm:$0xff] }
 0x106   : > { %2861 = vrot.lane.b32.xlu0 %v2860_v56, %s2983_s30  ;;  %v3859_v4 = vld [vmem:[#allocation2 + $0x1a0] sm:$0xff]  ;;  %v4451_v57 = vld [vmem:[#allocation10_spill] sm:$0xff] }
 0x107   : > { %v3799_v33 = vsel %vm1704_vm6, %v1676_v62, %v2573_v16  ;;  %v3802_v58 = vsel %vm1704_vm6, %v1677_v61, %v2574_v47  ;;  %v2577_v25 = vpop.permute.xlu1 %2576  ;;  %v498_v16 = vld [vmem:[#allocation2 + $0xc0] sm:$0xff]  ;;  %v499_v62 = vld [vmem:[#allocation2 + $0xc8] sm:$0xff] }
 0x108   : > { %v2579_v23 = vunpack.i.h.bf16 %v2577_v25  ;;  %v2578_v32 = vunpack.i.l.bf16 %v2577_v25  ;;  %v2582_v20 = vpop.permute.xlu0 %2581  ;;  %v3857_v25 = vld [vmem:[#allocation2 + $0x198] sm:$0xff]  ;;  %v293_v15 = vld [vmem:[#allocation2] sm:$0xff] }
 0x109   : > { %v2584_v42 = vunpack.i.h.bf16 %v2582_v20  ;;  %v2583_v38 = vunpack.i.l.bf16 %v2582_v20  ;;  %2866 = vrot.lane.b32.xlu1 %v3755_v40, %s2983_s30  ;;  %v3869_v20 = vld [vmem:[#allocation2 + $0xd9] sm:$0xff] }
 0x10a   : > { %v3811_v59 = vsel %vm1704_vm6, %v1678_v55, %v2578_v32  ;;  %v3814_v50 = vsel %vm1704_vm6, %v1679_v5, %v2579_v23  ;;  %2871 = vrot.lane.b32.xlu0 %v2870_v51, %s2978_s22  ;;  %v514_v51 = vld [vmem:[#allocation2 + $0x180] sm:$0xff]  ;;  %v2900_v32 = vpack.i.bf16 %v499_v62, %v498_v16 }
 0x10b   : > { %v3819_v37 = vsel %vm1704_vm6, %v3642_v12, %v2583_v38  ;;  %v3823_v2 = vsel %vm1704_vm6, %v3645_v35, %v2584_v42  ;;  %v2587_v7 = vpop.permute.xlu1 %2586  ;;  %v3836_v35 = vpack.i.bf16 %v468_v46, %v467_v24  ;;  %v3874_v42 = vld [vmem:[#allocation2 + $0xe1] sm:$0xff]  ;;  %v3876_v38 = vld [vmem:[#allocation2 + $0x199] sm:$0xff]  ;;  %v2905_v46 = vpack.i.bf16 %v515_v21, %v514_v51 }
 0x10c   : > { %v2589_v48 = vunpack.i.h.bf16 %v2587_v7  ;;  %v2588_v27 = vunpack.i.l.bf16 %v2587_v7  ;;  %v2592_v30 = vpop.permute.xlu0 %2591  ;;  %v3878_v7 = vld [vmem:[#allocation2 + $0x1a1] sm:$0xff] }
 0x10d   : > { %v2594_v60 = vunpack.i.h.bf16 %v2592_v30  ;;  %v2593_v10 = vunpack.i.l.bf16 %v2592_v30  ;;  %2876 = vrot.lane.b32.xlu1 %v3792_v52, %s2978_s22  ;;  %v3892_v16 = vld [vmem:[#allocation2 + $0xda] sm:$0xff] }
 0x10e   : > { %v3829_v43 = vsel %vm1704_vm6, %v3656_v44, %v2588_v27  ;;  %v3833_v12 = vsel %vm1704_vm6, %v3659_v13, %v2589_v48  ;;  %2881 = vrot.lane.b32.xlu0 %v2860_v56, %s2979_s23  ;;  %v294_v13 = vld [vmem:[#allocation2 + $0x8] sm:$0xff]  ;;  %v2910_v48 = vpack.i.bf16 %v501_v63, %v500_v19  ;;  %v2915_v27 = vpack.i.bf16 %v3859_v4, %v3857_v25  ;;  %v4445_v4 = vld [vmem:[#allocation16_spill] sm:$0xff]  ;;  %v4447_v21 = vld [vmem:[#allocation17_spill] sm:$0xff] }
 0x10f   : > { %4436 = vst [vmem:[#allocation6_spill] sm:$0xff] %v3829_v43  ;;  %4437 = vst [vmem:[#allocation5_spill] sm:$0xff] %v3833_v12  ;;  %v3840_v26 = vsel %vm1704_vm6, %v3664_v6, %v2593_v10  ;;  %v3844_v47 = vsel %vm1704_vm6, %v3667_v53, %v2594_v60  ;;  %v3846_v44 = vpop.permute.xlu1 %2596  ;;  %v2323_v6 = vunpack.i.l.bf16 %v3434_v39  ;;  %v3855_v53 = vpack.i.bf16 %v484_v45, %v483_v31  ;;  %v3867_v39 = vld [vmem:[#allocation2 + $0xc1] sm:$0xff]  ;;  %v4442_v10 = vld [vmem:[#allocation12_spill] sm:$0xff] }
 0x110   : > { %4438 = vst [vmem:[#allocation29_spill] sm:$0xff] %v3840_v26  ;;  %4439 = vst [vmem:[#allocation30_spill] sm:$0xff] %v3844_v47  ;;  %v2598_v61 = vunpack.i.l.bf16 %v3846_v44  ;;  %v3849_v56 = vpop.permute.xlu0 %2601  ;;  %v1607_v30 = vsel %vm172_vm0, %v294_v13, %v2324_v3  ;;  %v2364_v31 = vunpack.i.h.bf16 %v4442_v10  ;;  %v2920_v45 = vpack.i.bf16 %v3777_v11, %v3867_v39  ;;  %v3901_v19 = vld [vmem:[#allocation2 + $0xe2] sm:$0xff]  ;;  %v3903_v3 = vld [vmem:[#allocation2 + $0x19a] sm:$0xff] }
 0x111   : > { %2886 = vrot.lane.b32.xlu1 %v3755_v40, %s2979_s23  ;;  %v4441_v40 = vld [vmem:[#allocation11_spill] sm:$0xff]  ;;  %v1606_v60 = vsel %vm172_vm0, %v293_v15, %v2323_v6  ;;  %v2363_v62 = vunpack.i.l.bf16 %v4442_v10  ;;  %v3905_v6 = vld [vmem:[#allocation2 + $0x1a2] sm:$0xff]  ;;  %v2404_v15 = vunpack.i.h.bf16 %v4445_v4  ;;  %v2409_v13 = vunpack.i.h.bf16 %v4447_v21 }
 0x112   : > { %v3863_v23 = vsel %vm1704_vm6, %v3680_v1, %v2598_v61  ;;  %2891 = vrot.lane.b32.xlu0 %v3836_v35, %s2979_s23  ;;  %v2328_v55 = vunpack.i.l.bf16 %v4441_v40  ;;  %v2329_v1 = vunpack.i.h.bf16 %v4441_v40  ;;  %v4443_v61 = vld [vmem:[#allocation13_spill] sm:$0xff]  ;;  %v4444_v11 = vld [vmem:[#allocation3_spill] sm:$0xff]  ;;  %v4446_v40 = vld [vmem:[#allocation4_spill] sm:$0xff] }
 0x113   : > { %4440 = vst [vmem:[#allocation31_spill] sm:$0xff] %v3863_v23  ;;  %v3872_v5 = vpop.permute.xlu1 %2606  ;;  %v2369_v51 = vunpack.i.h.bf16 %v4443_v61  ;;  %v2368_v25 = vunpack.i.l.bf16 %v4443_v61  ;;  %v2408_v23 = vunpack.i.l.bf16 %v4447_v21  ;;  %v4448_v47 = vld [vmem:[#allocation18_spill] sm:$0xff] }
 0x114   : > { %v3881_v24 = vpop.permute.xlu0 %2611  ;;  %v1608_v63 = vsel %vm172_vm0, %v4444_v11, %v2328_v55  ;;  %v1609_v10 = vsel %vm172_vm0, %v4446_v40, %v2329_v1  ;;  %v2443_v26 = vunpack.i.l.bf16 %v4448_v47  ;;  %v4449_v55 = vld [vmem:[#allocation8_spill] sm:$0xff]  ;;  %v2444_v11 = vunpack.i.h.bf16 %v4448_v47  ;;  %v4450_v40 = vld [vmem:[#allocation7_spill] sm:$0xff]  ;;  %v4453_v47 = vld [vmem:[#allocation9_spill] sm:$0xff] }
 0x115   : > { %2896 = vrot.lane.b32.xlu1 %v3855_v53, %s2979_s23  ;;  %v1623_v61 = vsel %vm172_vm0, %v4449_v55, %v2364_v31  ;;  %v1622_v21 = vsel %vm172_vm0, %v4450_v40, %v2363_v62  ;;  %v1625_v22 = vsel %vm172_vm0, %v4451_v57, %v2369_v51  ;;  %v2448_v31 = vunpack.i.l.bf16 %v4452_v9  ;;  %v4454_v1 = vld [vmem:[#allocation22_spill] sm:$0xff] }
 0x116   : > { %2901 = vrot.lane.b32.xlu0 %v2900_v32, %s2980_s24  ;;  %v2403_v32 = vunpack.i.l.bf16 %v4445_v4  ;;  %v1640_v55 = vsel %vm1638_vm4, %v1607_v30, %v2404_v15  ;;  %v2483_v43 = vunpack.i.l.bf16 %v4454_v1  ;;  %v1641_v62 = vsel %vm1638_vm4, %v1608_v63, %v2408_v23  ;;  %v4455_v30 = vld [vmem:[#allocation23_spill] sm:$0xff] }
 0x117   : > { %v3912_v39 = vpop.permute.xlu1 %2616  ;;  %v1642_v57 = vsel %vm1638_vm4, %v1609_v10, %v2409_v13  ;;  %v1655_v51 = vsel %vm1638_vm4, %v1622_v21, %v2443_v26  ;;  %v2484_v9 = vunpack.i.h.bf16 %v4454_v1  ;;  %v2489_v15 = vunpack.i.h.bf16 %v4455_v30 }
 0x118   : > { %v3919_v49 = vpop.permute.xlu0 %2621  ;;  %v1639_v4 = vsel %vm1638_vm4, %v1606_v60, %v2403_v32  ;;  %v2488_v60 = vunpack.i.l.bf16 %v4455_v30  ;;  %v2523_v32 = vunpack.i.l.bf16 %v3673_v34  ;;  %v1658_v23 = vsel %vm1638_vm4, %v1625_v22, %v2449_v8 }
 0x119   : > { %2906 = vrot.lane.b32.xlu1 %v2905_v46, %s2980_s24  ;;  %v1624_v46 = vsel %vm172_vm0, %v4453_v47, %v2368_v25  ;;  %v1656_v25 = vsel %vm1638_vm4, %v1623_v61, %v2444_v11  ;;  %v2524_v26 = vunpack.i.h.bf16 %v3673_v34  ;;  %v2528_v63 = vunpack.i.l.bf16 %v3687_v18 }
 0x11a   : > { %2911 = vrot.lane.b32.xlu0 %v2910_v48, %s2980_s24  ;;  %v1657_v13 = vsel %vm1638_vm4, %v1624_v46, %v2448_v31  ;;  %v1672_v10 = vsel %vm1671_vm5, %v1639_v4, %v2483_v43  ;;  %v2529_v61 = vunpack.i.h.bf16 %v3687_v18  ;;  %v2564_v11 = vunpack.i.h.bf16 %v3752_v14 }
 0x11b   : > { %v3941_v12 = vpop.permute.xlu1 %2626  ;;  %v2563_v1 = vunpack.i.l.bf16 %v3752_v14  ;;  %v1673_v8 = vsel %vm1671_vm5, %v1640_v55, %v2484_v9  ;;  %v2569_v22 = vunpack.i.h.bf16 %v3775_v54  ;;  %v2568_v34 = vunpack.i.l.bf16 %v3775_v54 }
 0x11c   : > { %v3947_v48 = vpop.permute.xlu0 %2631  ;;  %v1674_v43 = vsel %vm1671_vm5, %v1641_v62, %v2488_v60  ;;  %v1675_v18 = vsel %vm1671_vm5, %v1642_v57, %v2489_v15  ;;  %v1688_v4 = vsel %vm1671_vm5, %v1655_v51, %v2523_v32  ;;  %v2604_v14 = vunpack.i.h.bf16 %v3849_v56 }
 0x11d   : > { %2916 = vrot.lane.b32.xlu1 %v2915_v27, %s2980_s24  ;;  %v2599_v27 = vunpack.i.h.bf16 %v3846_v44  ;;  %v1689_v21 = vsel %vm1671_vm5, %v1656_v25, %v2524_v26  ;;  %v1690_v54 = vsel %vm1671_vm5, %v1657_v13, %v2528_v63  ;;  %v2603_v44 = vunpack.i.l.bf16 %v3849_v56 }
 0x11e   : > { %2921 = vrot.lane.b32.xlu0 %v2920_v45, %s2982_s29  ;;  %v2608_v31 = vunpack.i.l.bf16 %v3872_v5  ;;  %v4456_v47 = vpack.i.bf16 %v3874_v42, %v3869_v20  ;;  %v1691_v46 = vsel %vm1671_vm5, %v1658_v23, %v2529_v61  ;;  %v1705_v55 = vsel %vm1704_vm6, %v1672_v10, %v2563_v1 }
 0x11f   : > { %v3963_v40 = vpop.permute.xlu1 %2636  ;;  %v1706_v62 = vsel %vm1704_vm6, %v1673_v8, %v2564_v11  ;;  %v1707_v56 = vsel %vm1704_vm6, %v1674_v43, %v2568_v34  ;;  %v1708_v51 = vsel %vm1704_vm6, %v1675_v18, %v2569_v22  ;;  %v1721_v9 = vsel %vm1704_vm6, %v1688_v4, %v2599_v27 }
 0x120   : > { %v3969_v45 = vpop.permute.xlu0 %2641  ;;  %v2614_v20 = vunpack.i.h.bf16 %v3881_v24  ;;  %v1723_v25 = vsel %vm1704_vm6, %v1690_v54, %v2604_v14  ;;  %v2619_v30 = vunpack.i.h.bf16 %v3912_v39  ;;  %v2618_v15 = vunpack.i.l.bf16 %v3912_v39 }
 0x121   : > { %2926 = vrot.lane.b32.xlu1 %v3792_v52, %s2982_s29  ;;  %v2613_v52 = vunpack.i.l.bf16 %v3881_v24  ;;  %v2623_v60 = vunpack.i.l.bf16 %v3919_v49  ;;  %v4457_v32 = vpack.i.bf16 %v3878_v7, %v3876_v38  ;;  %v1722_v23 = vsel %vm1704_vm6, %v1689_v21, %v2603_v44 }
 0x122   : > { %2931 = vrot.lane.b32.xlu0 %v4456_v47, %s2982_s29  ;;  %v1724_v13 = vsel %vm1704_vm6, %v1691_v46, %v2608_v31  ;;  %v2624_v24 = vunpack.i.h.bf16 %v3919_v49  ;;  %v2628_v26 = vunpack.i.l.bf16 %v3941_v12  ;;  %v2629_v63 = vunpack.i.h.bf16 %v3941_v12 }
 0x123   : > { %v3989_v57 = vpop.permute.xlu1 %2646  ;;  %v1738_v39 = vsel %vm1737_vm7, %v1705_v55, %v2613_v52  ;;  %v2634_v10 = vunpack.i.h.bf16 %v3947_v48  ;;  %v2633_v38 = vunpack.i.l.bf16 %v3947_v48  ;;  %v1739_v61 = vsel %vm1737_vm7, %v1706_v62, %v2614_v20 }
 0x124   : > { %v2652_v42 = vpop.permute.xlu0 %2651  ;;  %v2639_v11 = vunpack.i.h.bf16 %v3963_v40  ;;  %v2638_v49 = vunpack.i.l.bf16 %v3963_v40  ;;  %v2643_v1 = vunpack.i.l.bf16 %v3969_v45  ;;  %v1755_v22 = vsel %vm1737_vm7, %v1722_v23, %v2619_v30 }
 0x125   : > { %2936 = vrot.lane.b32.xlu1 %v4457_v32, %s2982_s29  ;;  %v1740_v12 = vsel %vm1737_vm7, %v1707_v56, %v2623_v60  ;;  %v2644_v34 = vunpack.i.h.bf16 %v3969_v45  ;;  %v1741_v48 = vsel %vm1737_vm7, %v1708_v51, %v2624_v24  ;;  %v1756_v27 = vsel %vm1737_vm7, %v1723_v25, %v2628_v26 }
 0x126   : > { %2941 = vrot.lane.b32.xlu0 %v3836_v35, %s2983_s30  ;;  %v1754_v35 = vsel %vm1737_vm7, %v1721_v9, %v2618_v15  ;;  %v2654_v43 = vunpack.i.h.bf16 %v2652_v42  ;;  %v2653_v40 = vunpack.i.l.bf16 %v2652_v42  ;;  %v4458_v18 = vpack.i.bf16 %v3901_v19, %v3892_v16 }
 0x127   : > { %v2657_v7 = vpop.permute.xlu1 %2656  ;;  %v1757_v4 = vsel %vm1737_vm7, %v1724_v13, %v2629_v63  ;;  %v1771_v14 = vsel %vm1770_vm8, %v1738_v39, %v2633_v38  ;;  %v1772_v45 = vsel %vm1770_vm8, %v1739_v61, %v2634_v10  ;;  %v1788_v44 = vsel %vm1770_vm8, %v1755_v22, %v2639_v11 }
 0x128   : > { %v2662_v8 = vpop.permute.xlu0 %2661  ;;  %v2658_v21 = vunpack.i.l.bf16 %v2657_v7  ;;  %v1773_v31 = vsel %vm1770_vm8, %v1740_v12, %v2643_v1  ;;  %v2659_v47 = vunpack.i.h.bf16 %v2657_v7  ;;  %v1774_v55 = vsel %vm1770_vm8, %v1741_v48, %v2644_v34 }
 0x129   : > { %2946 = vrot.lane.b32.xlu1 %v3855_v53, %s2983_s30  ;;  %v1787_v53 = vsel %vm1770_vm8, %v1754_v35, %v2638_v49  ;;  %v2649_v16 = vunpack.i.h.bf16 %v3989_v57  ;;  %v4459_v52 = vpack.i.bf16 %v3905_v6, %v3903_v3  ;;  %v2664_v56 = vunpack.i.h.bf16 %v2662_v8 }
 0x12a   : > { %2951 = vrot.lane.b32.xlu0 %v4458_v18, %s2983_s30  ;;  %v2663_v51 = vunpack.i.l.bf16 %v2662_v8  ;;  %v1804_v9 = vsel %vm1803_vm9, %v1771_v14, %v2653_v40  ;;  %v1805_v20 = vsel %vm1803_vm9, %v1772_v45, %v2654_v43  ;;  %v2648_v42 = vunpack.i.l.bf16 %v3989_v57 }
 0x12b   : > { %v2667_v54 = vpop.permute.xlu1 %2666  ;;  %v1820_v60 = vsel %vm1803_vm9, %v1787_v53, %v2658_v21  ;;  %v1821_v6 = vsel %vm1803_vm9, %v1788_v44, %v2659_v47  ;;  %v1807_v57 = vsel %vm1803_vm9, %v1774_v55, %v2664_v56  ;;  %v1790_v35 = vsel %vm1770_vm8, %v1757_v4, %v2649_v16  ;;  %v4460_v53 = vld [vmem:[#allocation14_spill] sm:$0xff]  ;;  %v4461_v55 = vld [vmem:[#allocation15_spill] sm:$0xff] }
 0x12c   : > { %v2672_v46 = vpop.permute.xlu0 %2671  ;;  %v2669_v24 = vunpack.i.h.bf16 %v2667_v54  ;;  %v2668_v26 = vunpack.i.l.bf16 %v2667_v54  ;;  %v1806_v10 = vsel %vm1803_vm9, %v1773_v31, %v2663_v51  ;;  %v1789_v61 = vsel %vm1770_vm8, %v1756_v27, %v2648_v42  ;;  %v4463_v51 = vld [vmem:[#allocation21_spill] sm:$0xff] }
 0x12d   : > { %v2674_v19 = vunpack.i.h.bf16 %v2672_v46  ;;  %v2673_v62 = vunpack.i.l.bf16 %v2672_v46  ;;  %2956 = vrot.lane.b32.xlu1 %v4459_v52, %s2983_s30  ;;  %v2374_v44 = vunpack.i.h.bf16 %v4460_v53  ;;  %v2373_v47 = vunpack.i.l.bf16 %v4460_v53 }
 0x12e   : > { %v1822_v43 = vsel %vm1803_vm9, %v1789_v61, %v2668_v26  ;;  %v1823_v40 = vsel %vm1803_vm9, %v1790_v35, %v2669_v24  ;;  %v2379_v16 = vunpack.i.h.bf16 %v4461_v55  ;;  %v2964_v26 = vld [vmem:[#allocation2 + $0x110] sm:$0xff] }
 0x12f   : > { %v2677_v25 = vpop.permute.xlu1 %2676  ;;  %v1837_v30 = vsel %vm1836_vm10, %v1804_v9, %v2673_v62  ;;  %v1838_v15 = vsel %vm1836_vm10, %v1805_v20, %v2674_v19  ;;  %v2378_v19 = vunpack.i.l.bf16 %v4461_v55  ;;  %v4462_v62 = vld [vmem:[#allocation20_spill] sm:$0xff]  ;;  %v2459_v9 = vunpack.i.h.bf16 %v4463_v51 }
 0x130   : > { %v2679_v32 = vunpack.i.h.bf16 %v2677_v25  ;;  %v2678_v23 = vunpack.i.l.bf16 %v2677_v25  ;;  %v2682_v13 = vpop.permute.xlu0 %2681  ;;  %v1869_v3 = vpack.c.bf16 %v1838_v15, %v1837_v30  ;;  %v2453_v52 = vunpack.i.l.bf16 %v4462_v62  ;;  %v2962_v20 = vld [vmem:[#allocation2 + $0xf8] sm:$0xff] }
 0x131   : > { %v2684_v39 = vunpack.i.h.bf16 %v2682_v13  ;;  %v2683_v63 = vunpack.i.l.bf16 %v2682_v13  ;;  %v2454_v56 = vunpack.i.h.bf16 %v4462_v62  ;;  %v1627_v42 = vsel %vm172_vm0, %v2962_v20, %v2374_v44 }
 0x132   : > { %2266 = vmatprep.mubr.msk.bf16.mxu0 %vm1907_vm11, %v1869_v3  ;;  %v1853_v38 = vsel %vm1836_vm10, %v1820_v60, %v2678_v23  ;;  %v1854_v7 = vsel %vm1836_vm10, %v1821_v6, %v2679_v32  ;;  %v2458_v25 = vunpack.i.l.bf16 %v4463_v51  ;;  %v2534_v30 = vunpack.i.h.bf16 %v3691_v17  ;;  %v2963_v32 = vld [vmem:[#allocation2 + $0xf0] sm:$0xff] }
 0x133   : > { %v1839_v11 = vsel %vm1836_vm10, %v1806_v10, %v2683_v63  ;;  %v1840_v49 = vsel %vm1836_vm10, %v1807_v57, %v2684_v39  ;;  %v2687_v1 = vpop.permute.xlu1 %2686  ;;  %v1877_v8 = vpack.c.bf16 %v1854_v7, %v1853_v38  ;;  %v2533_v15 = vunpack.i.l.bf16 %v3691_v17  ;;  %v2965_v63 = vld [vmem:[#allocation2 + $0x108] sm:$0xff] }
 0x134   : > { %v1870_v22 = vpack.c.bf16 %v1840_v49, %v1839_v11  ;;  %v2689_v12 = vunpack.i.h.bf16 %v2687_v1  ;;  %v2688_v34 = vunpack.i.l.bf16 %v2687_v1  ;;  %v2692_v48 = vpop.permute.xlu0 %2691  ;;  %v1626_v23 = vsel %vm172_vm0, %v2963_v32, %v2373_v47 }
 0x135   : > { %2282 = vmatprep.mubr.msk.bf16.mxu1 %vm1907_vm11, %v1877_v8  ;;  %v2539_v13 = vunpack.i.h.bf16 %v3699_v28  ;;  %v2538_v3 = vunpack.i.l.bf16 %v3699_v28  ;;  %v2609_v6 = vunpack.i.h.bf16 %v3872_v5  ;;  %v1629_v39 = vsel %vm172_vm0, %v2964_v26, %v2379_v16 }
 0x136   : > { %v1855_v27 = vsel %vm1836_vm10, %v1822_v43, %v2688_v34  ;;  %v1856_v18 = vsel %vm1836_vm10, %v1823_v40, %v2689_v12  ;;  %2267 = vmatmul.mubr.msk.bf16.vlgmr.msra.gmra.mxu0 %vm1907_vm11, %v1870_v22  ;;  %v1628_v10 = vsel %vm172_vm0, %v2965_v63, %v2378_v19  ;;  %v1659_v57 = vsel %vm1638_vm4, %v1626_v23, %v2453_v52 }
 0x137   : > { %v1878_v14 = vpack.c.bf16 %v1856_v18, %v1855_v27  ;;  %v4063_v45 = vpop.permute.xlu1 %2696  ;;  %v2694_v17 = vunpack.i.h.bf16 %v2692_v48  ;;  %v1660_v38 = vsel %vm1638_vm4, %v1627_v42, %v2454_v56  ;;  %v1662_v7 = vsel %vm1638_vm4, %v1629_v39, %v2459_v9 }
 0x138   : > { %v2702_v4 = vpop.permute.xlu0 %2701  ;;  %v2693_v61 = vunpack.i.l.bf16 %v2692_v48  ;;  %v2698_v11 = vunpack.i.l.bf16 %v4063_v45  ;;  %v1661_v28 = vsel %vm1638_vm4, %v1628_v10, %v2458_v25  ;;  %v1692_v5 = vsel %vm1671_vm5, %v1659_v57, %v2533_v15 }
 0x139   : > { %2283 = vmatmul.mubr.msk.bf16.vlgmr.msra.gmra.mxu1 %vm1907_vm11, %v1878_v14  ;;  %v1693_v49 = vsel %vm1671_vm5, %v1660_v38, %v2534_v30  ;;  %v2703_v1 = vunpack.i.l.bf16 %v2702_v4  ;;  %v1694_v35 = vsel %vm1671_vm5, %v1661_v28, %v2538_v3  ;;  %v1695_v22 = vsel %vm1671_vm5, %v1662_v7, %v2539_v13 }
 0x13a   : > { %v1725_v12 = vsel %vm1704_vm6, %v1692_v5, %v2609_v6  ;;  %v2704_v34 = vunpack.i.h.bf16 %v2702_v4  ;;  %v1727_v48 = vsel %vm1704_vm6, %v1694_v35, %v2694_v17  ;;  %v1726_v14 = vsel %vm1704_vm6, %v1693_v49, %v2693_v61 }
 0x13b   : > { %v4066_v21 = vpop.permute.xlu1 %2706  ;;  %v1728_v53 = vsel %vm1704_vm6, %v1695_v22, %v2698_v11  ;;  %v1742_v4 = vsel %vm1737_vm7, %v3799_v33, %v2703_v1 }
 0x13c   : > { %v4068_v54 = vpop.permute.xlu0 %2711  ;;  %v2709_v40 = vunpack.i.h.bf16 %v4066_v21  ;;  %v2708_v27 = vunpack.i.l.bf16 %v4066_v21  ;;  %v1743_v62 = vsel %vm1737_vm7, %v3802_v58, %v2704_v34 }
 0x13d   : > { %v2714_v18 = vunpack.i.h.bf16 %v4068_v54  ;;  %v2713_v44 = vunpack.i.l.bf16 %v4068_v54 }
 0x13e   : > { %v1758_v54 = vsel %vm1737_vm7, %v1725_v12, %v2708_v27  ;;  %v1759_v20 = vsel %vm1737_vm7, %v1726_v14, %v2709_v40 }
 0x13f   : > { %v4071_v31 = vpop.permute.xlu1 %2716  ;;  %v1745_v33 = vsel %vm1737_vm7, %v3814_v50, %v2714_v18  ;;  %v1744_v42 = vsel %vm1737_vm7, %v3811_v59, %v2713_v44 }
 0x140   : > { %v4074_v46 = vpop.permute.xlu0 %2721  ;;  %v2718_v47 = vunpack.i.l.bf16 %v4071_v31  ;;  %v2719_v55 = vunpack.i.h.bf16 %v4071_v31 }
 0x141   : > { %v2724_v16 = vunpack.i.h.bf16 %v4074_v46  ;;  %v2723_v19 = vunpack.i.l.bf16 %v4074_v46 }
 0x142   : > { %v1760_v46 = vsel %vm1737_vm7, %v1727_v48, %v2718_v47  ;;  %v1761_v58 = vsel %vm1737_vm7, %v1728_v53, %v2719_v55 }
 0x143   : > { %v2727_v60 = vpop.permute.xlu1 %2726  ;;  %v1775_v15 = vsel %vm1770_vm8, %v1742_v4, %v2723_v19 }
 0x144   : > { %v2732_v24 = vpop.permute.xlu0 %2731  ;;  %v2729_v52 = vunpack.i.h.bf16 %v2727_v60  ;;  %v2728_v56 = vunpack.i.l.bf16 %v2727_v60  ;;  %v1776_v60 = vsel %vm1770_vm8, %v1743_v62, %v2724_v16 }
 0x145   : > { %v2733_v51 = vunpack.i.l.bf16 %v2732_v24  ;;  %v2734_v31 = vunpack.i.h.bf16 %v2732_v24 }
 0x146   : > { %v1791_v13 = vsel %vm1770_vm8, %v1758_v54, %v2728_v56  ;;  %v1792_v50 = vsel %vm1770_vm8, %v1759_v20, %v2729_v52 }
 0x147   : > { %v4098_v8 = vpop.permute.xlu1 %2736  ;;  %v1777_v3 = vsel %vm1770_vm8, %v1744_v42, %v2733_v51  ;;  %v1778_v24 = vsel %vm1770_vm8, %v1745_v33, %v2734_v31 }
 0x148   : > { %v2742_v43 = vpop.permute.xlu0 %2741  ;;  %v2739_v26 = vunpack.i.h.bf16 %v4098_v8  ;;  %v2738_v7 = vunpack.i.l.bf16 %v4098_v8 }
 0x149   : > { %v2744_v25 = vunpack.i.h.bf16 %v2742_v43  ;;  %v2743_v30 = vunpack.i.l.bf16 %v2742_v43 }
 0x14a   : > { %v1793_v53 = vsel %vm1770_vm8, %v1760_v46, %v2738_v7  ;;  %v1794_v16 = vsel %vm1770_vm8, %v1761_v58, %v2739_v26 }
 0x14b   : > { %v2747_v21 = vpop.permute.xlu1 %2746  ;;  %v1808_v10 = vsel %vm1803_vm9, %v1775_v15, %v2743_v30  ;;  %v1809_v57 = vsel %vm1803_vm9, %v1776_v60, %v2744_v25  ;;  %v2699_v15 = vunpack.i.h.bf16 %v4063_v45 }
 0x14c   : > { %v2752_v9 = vpop.permute.xlu0 %2751  ;;  %v2748_v32 = vunpack.i.l.bf16 %v2747_v21  ;;  %v2749_v6 = vunpack.i.h.bf16 %v2747_v21 }
 0x14d   : > { %v2754_v17 = vunpack.i.h.bf16 %v2752_v9  ;;  %v2753_v38 = vunpack.i.l.bf16 %v2752_v9 }
 0x14e   : > { %v1824_v61 = vsel %vm1803_vm9, %v1791_v13, %v2748_v32  ;;  %v1825_v49 = vsel %vm1803_vm9, %v1792_v50, %v2749_v6  ;;  %v1729_v6 = vsel %vm1704_vm6, %v3719_v29, %v2699_v15 }
 0x14f   : > { %v2757_v23 = vpop.permute.xlu1 %2756  ;;  %v1810_v27 = vsel %vm1803_vm9, %v1777_v3, %v2753_v38  ;;  %v1811_v8 = vsel %vm1803_vm9, %v1778_v24, %v2754_v17 }
 0x150   : > { %v2762_v59 = vpop.permute.xlu0 %2761  ;;  %v2759_v34 = vunpack.i.h.bf16 %v2757_v23  ;;  %v2758_v43 = vunpack.i.l.bf16 %v2757_v23 }
 0x151   : > { %v2764_v39 = vunpack.i.h.bf16 %v2762_v59  ;;  %v2763_v63 = vunpack.i.l.bf16 %v2762_v59 }
 0x152   : > { %v1826_v56 = vsel %vm1803_vm9, %v1793_v53, %v2758_v43  ;;  %v1827_v51 = vsel %vm1803_vm9, %v1794_v16, %v2759_v34 }
 0x153   : > { %v1841_v11 = vsel %vm1836_vm10, %v1808_v10, %v2763_v63  ;;  %v1842_v28 = vsel %vm1836_vm10, %v1809_v57, %v2764_v39  ;;  %v2767_v5 = vpop.permute.xlu1 %2766 }
 0x154   : > { %v1871_v1 = vpack.c.bf16 %v1842_v28, %v1841_v11  ;;  %v2769_v35 = vunpack.i.h.bf16 %v2767_v5  ;;  %v2768_v22 = vunpack.i.l.bf16 %v2767_v5  ;;  %v2772_v12 = vpop.permute.xlu0 %2771 }
 0x155   : > { %v2774_v48 = vunpack.i.h.bf16 %v2772_v12  ;;  %v2773_v40 = vunpack.i.l.bf16 %v2772_v12 }
 0x156   : > { %v1857_v18 = vsel %vm1836_vm10, %v1824_v61, %v2768_v22  ;;  %v1858_v14 = vsel %vm1836_vm10, %v1825_v49, %v2769_v35  ;;  %2270 = vmatprep.mubr.msk.bf16.mxu0 %vm1907_vm11, %v1871_v1  ;;  %v4464_v22 = vld [vmem:[#allocation5_spill] sm:$0xff] }
 0x157   : > { %v1879_v44 = vpack.c.bf16 %v1858_v14, %v1857_v18  ;;  %v1843_v47 = vsel %vm1836_vm10, %v1810_v27, %v2773_v40  ;;  %v1844_v4 = vsel %vm1836_vm10, %v1811_v8, %v2774_v48  ;;  %v2777_v55 = vpop.permute.xlu1 %2776 }
 0x158   : > { %v1872_v19 = vpack.c.bf16 %v1844_v4, %v1843_v47  ;;  %v2779_v21 = vunpack.i.h.bf16 %v2777_v55  ;;  %v2778_v62 = vunpack.i.l.bf16 %v2777_v55  ;;  %v2782_v52 = vpop.permute.xlu0 %2781 }
 0x159   : > { %2286 = vmatprep.mubr.msk.bf16.mxu1 %vm1907_vm11, %v1879_v44  ;;  %v2784_v32 = vunpack.i.h.bf16 %v2782_v52  ;;  %v2783_v23 = vunpack.i.l.bf16 %v2782_v52 }
 0x15a   : > { %v1859_v9 = vsel %vm1836_vm10, %v1826_v56, %v2778_v62  ;;  %v1860_v54 = vsel %vm1836_vm10, %v1827_v51, %v2779_v21  ;;  %2271 = vmatmul.mubr.msk.bf16.gmra.mxu0 %vm1907_vm11, %v1872_v19 }
 0x15b   : > { %v1880_v20 = vpack.c.bf16 %v1860_v54, %v1859_v9  ;;  %v4155_v33 = vpop.permute.xlu1 %2786  ;;  %v1731_v26 = vsel %vm1704_vm6, %v3734_v41, %v2784_v32  ;;  %v1730_v45 = vsel %vm1704_vm6, %v3722_v0, %v2783_v23 }
 0x15c   : > { %v2792_v31 = vpop.permute.xlu0 %2791  ;;  %v2788_v13 = vunpack.i.l.bf16 %v4155_v33 }
 0x15d   : > { %2287 = vmatmul.mubr.msk.bf16.gmra.mxu1 %vm1907_vm11, %v1880_v20  ;;  %v2793_v50 = vunpack.i.l.bf16 %v2792_v31  ;;  %v2794_v59 = vunpack.i.h.bf16 %v2792_v31 }
 0x15e   : > { %v1732_v57 = vsel %vm1704_vm6, %v3737_v36, %v2788_v13 }
 0x15f   : > { %v2797_v42 = vpop.permute.xlu1 %2796  ;;  %v1746_v7 = vsel %vm1737_vm7, %v3819_v37, %v2793_v50  ;;  %v1747_v41 = vsel %vm1737_vm7, %v3823_v2, %v2794_v59  ;;  %v4465_v37 = vld [vmem:[#allocation6_spill] sm:$0xff] }
 0x160   : > { %v2802_v46 = vpop.permute.xlu0 %2801  ;;  %v2799_v39 = vunpack.i.h.bf16 %v2797_v42  ;;  %v2798_v63 = vunpack.i.l.bf16 %v2797_v42 }
 0x161   : > { %v2804_v10 = vunpack.i.h.bf16 %v2802_v46  ;;  %v2803_v17 = vunpack.i.l.bf16 %v2802_v46 }
 0x162   : > { %v1762_v0 = vsel %vm1737_vm7, %v1729_v6, %v2798_v63  ;;  %v1763_v36 = vsel %vm1737_vm7, %v1730_v45, %v2799_v39 }
 0x163   : > { %v2807_v25 = vpop.permute.xlu1 %2806  ;;  %v1749_v12 = vsel %vm1737_vm7, %v4464_v22, %v2804_v10  ;;  %v1748_v43 = vsel %vm1737_vm7, %v4465_v37, %v2803_v17  ;;  %v2789_v37 = vunpack.i.h.bf16 %v4155_v33 }
 0x164   : > { %v2812_v30 = vpop.permute.xlu0 %2811  ;;  %v2808_v38 = vunpack.i.l.bf16 %v2807_v25  ;;  %v2809_v29 = vunpack.i.h.bf16 %v2807_v25 }
 0x165   : > { %v2814_v61 = vunpack.i.h.bf16 %v2812_v30  ;;  %v2813_v11 = vunpack.i.l.bf16 %v2812_v30 }
 0x166   : > { %v1764_v48 = vsel %vm1737_vm7, %v1731_v26, %v2808_v38  ;;  %v1765_v2 = vsel %vm1737_vm7, %v1732_v57, %v2809_v29 }
 0x167   : > { %v2817_v58 = vpop.permute.xlu1 %2816  ;;  %v1779_v8 = vsel %vm1770_vm8, %v1746_v7, %v2813_v11  ;;  %v1780_v18 = vsel %vm1770_vm8, %v1747_v41, %v2814_v61 }
 0x168   : > { %v2822_v60 = vpop.permute.xlu0 %2821  ;;  %v2819_v5 = vunpack.i.h.bf16 %v2817_v58  ;;  %v2818_v49 = vunpack.i.l.bf16 %v2817_v58 }
 0x169   : > { %v2823_v1 = vunpack.i.l.bf16 %v2822_v60  ;;  %v2824_v34 = vunpack.i.h.bf16 %v2822_v60 }
 0x16a   : > { %v1795_v44 = vsel %vm1770_vm8, %v1762_v0, %v2818_v49  ;;  %v1796_v47 = vsel %vm1770_vm8, %v1763_v36, %v2819_v5 }
 0x16b   : > { %v4160_v3 = vpop.permute.xlu1 %2826  ;;  %v1781_v4 = vsel %vm1770_vm8, %v1748_v43, %v2823_v1  ;;  %v1782_v19 = vsel %vm1770_vm8, %v1749_v12, %v2824_v34 }
 0x16c   : > { %v2832_v24 = vpop.permute.xlu0 %2831  ;;  %v2829_v21 = vunpack.i.h.bf16 %v4160_v3  ;;  %v2828_v20 = vunpack.i.l.bf16 %v4160_v3 }
 0x16d   : > { %v2834_v40 = vunpack.i.h.bf16 %v2832_v24  ;;  %v2833_v27 = vunpack.i.l.bf16 %v2832_v24 }
 0x16e   : > { %v1797_v39 = vsel %vm1770_vm8, %v1764_v48, %v2828_v20  ;;  %v1798_v17 = vsel %vm1770_vm8, %v1765_v2, %v2829_v21 }
 0x16f   : > { %v2837_v28 = vpop.permute.xlu1 %2836  ;;  %v1812_v56 = vsel %vm1803_vm9, %v1779_v8, %v2833_v27  ;;  %v1813_v51 = vsel %vm1803_vm9, %v1780_v18, %v2834_v40 }
 0x170   : > { %v2842_v35 = vpop.permute.xlu0 %2841  ;;  %v2838_v14 = vunpack.i.l.bf16 %v2837_v28  ;;  %v2839_v55 = vunpack.i.h.bf16 %v2837_v28 }
 0x171   : > { %v2844_v9 = vunpack.i.h.bf16 %v2842_v35  ;;  %v2843_v54 = vunpack.i.l.bf16 %v2842_v35 }
 0x172   : > { %v1828_v31 = vsel %vm1803_vm9, %v1795_v44, %v2838_v14  ;;  %v1829_v30 = vsel %vm1803_vm9, %v1796_v47, %v2839_v55  ;;  %v4466_v14 = vld [vmem:[#allocation25_spill] sm:$0xff]  ;;  %v4467_v44 = vld [vmem:[#allocation24_spill] sm:$0xff] }
 0x173   : > { %v2847_v53 = vpop.permute.xlu1 %2846  ;;  %v1814_v59 = vsel %vm1803_vm9, %v1781_v4, %v2843_v54  ;;  %v1815_v3 = vsel %vm1803_vm9, %v1782_v19, %v2844_v9 }
 0x174   : > { %v2852_v16 = vpop.permute.xlu0 %2851  ;;  %v2849_v23 = vunpack.i.h.bf16 %v2847_v53  ;;  %v2848_v13 = vunpack.i.l.bf16 %v2847_v53  ;;  %v1733_v53 = vsel %vm1704_vm6, %v4466_v14, %v2789_v37 }
 0x175   : > { %v2854_v62 = vunpack.i.h.bf16 %v2852_v16  ;;  %v2853_v52 = vunpack.i.l.bf16 %v2852_v16  ;;  %v4468_v16 = vld [vmem:[#allocation26_spill] sm:$0xff] }
 0x176   : > { %v1830_v11 = vsel %vm1803_vm9, %v1797_v39, %v2848_v13  ;;  %v1831_v28 = vsel %vm1803_vm9, %v1798_v17, %v2849_v23 }
 0x177   : > { %v1845_v42 = vsel %vm1836_vm10, %v1812_v56, %v2853_v52  ;;  %v1846_v46 = vsel %vm1836_vm10, %v1813_v51, %v2854_v62  ;;  %v2857_v25 = vpop.permute.xlu1 %2856  ;;  %v4469_v52 = vld [vmem:[#allocation27_spill] sm:$0xff]  ;;  %v4470_v51 = vld [vmem:[#allocation28_spill] sm:$0xff] }
 0x178   : > { %v1873_v58 = vpack.c.bf16 %v1846_v46, %v1845_v42  ;;  %v2859_v15 = vunpack.i.h.bf16 %v2857_v25  ;;  %v2858_v60 = vunpack.i.l.bf16 %v2857_v25  ;;  %v2862_v32 = vpop.permute.xlu0 %2861 }
 0x179   : > { %v2864_v50 = vunpack.i.h.bf16 %v2862_v32  ;;  %v2863_v6 = vunpack.i.l.bf16 %v2862_v32 }
 0x17a   : > { %v1861_v24 = vsel %vm1836_vm10, %v1828_v31, %v2858_v60  ;;  %v1862_v26 = vsel %vm1836_vm10, %v1829_v30, %v2859_v15  ;;  %2274 = vmatprep.mubr.msk.bf16.mxu0 %vm1907_vm11, %v1873_v58  ;;  %v4471_v31 = vld [vmem:[#allocation29_spill] sm:$0xff]  ;;  %v4472_v15 = vld [vmem:[#allocation30_spill] sm:$0xff] }
 0x17b   : > { %v1881_v63 = vpack.c.bf16 %v1862_v26, %v1861_v24  ;;  %v1847_v10 = vsel %vm1836_vm10, %v1814_v59, %v2863_v6  ;;  %v1848_v45 = vsel %vm1836_vm10, %v1815_v3, %v2864_v50  ;;  %v2867_v57 = vpop.permute.xlu1 %2866  ;;  %v4473_v3 = vld [vmem:[#allocation31_spill] sm:$0xff] }
 0x17c   : > { %v1874_v38 = vpack.c.bf16 %v1848_v45, %v1847_v10  ;;  %v2869_v7 = vunpack.i.h.bf16 %v2867_v57  ;;  %v2868_v29 = vunpack.i.l.bf16 %v2867_v57  ;;  %v2872_v61 = vpop.permute.xlu0 %2871 }
 0x17d   : > { %2290 = vmatprep.mubr.msk.bf16.mxu1 %vm1907_vm11, %v1881_v63  ;;  %v2874_v43 = vunpack.i.h.bf16 %v2872_v61  ;;  %v2873_v40 = vunpack.i.l.bf16 %v2872_v61 }
 0x17e   : > { %v1863_v41 = vsel %vm1836_vm10, %v1830_v11, %v2868_v29  ;;  %v1864_v5 = vsel %vm1836_vm10, %v1831_v28, %v2869_v7  ;;  %2275 = vmatmul.mubr.msk.bf16.gmra.mxu0 %vm1907_vm11, %v1874_v38 }
 0x17f   : > { %v1882_v49 = vpack.c.bf16 %v1864_v5, %v1863_v41  ;;  %v2877_v1 = vpop.permute.xlu1 %2876  ;;  %v1720_v47 = vsel %vm1704_vm6, %v4467_v44, %v2874_v43  ;;  %v1734_v19 = vsel %vm1704_vm6, %v4468_v16, %v2873_v40 }
 0x180   : > { %v2882_v35 = vpop.permute.xlu0 %2881  ;;  %v2879_v27 = vunpack.i.h.bf16 %v2877_v1  ;;  %v2878_v2 = vunpack.i.l.bf16 %v2877_v1 }
 0x181   : > { %2291 = vmatmul.mubr.msk.bf16.gmra.mxu1 %vm1907_vm11, %v1882_v49  ;;  %v2883_v8 = vunpack.i.l.bf16 %v2882_v35  ;;  %v2884_v4 = vunpack.i.h.bf16 %v2882_v35 }
 0x182   : > { %v1735_v56 = vsel %vm1704_vm6, %v4469_v52, %v2878_v2  ;;  %v1736_v9 = vsel %vm1704_vm6, %v4470_v51, %v2879_v27 }
 0x183   : > { %v2887_v0 = vpop.permute.xlu1 %2886  ;;  %v1750_v42 = vsel %vm1737_vm7, %v4471_v31, %v2883_v8  ;;  %v1751_v60 = vsel %vm1737_vm7, %v4472_v15, %v2884_v4 }
 0x184   : > { %v2892_v36 = vpop.permute.xlu0 %2891  ;;  %v2889_v33 = vunpack.i.h.bf16 %v2887_v0  ;;  %v2888_v21 = vunpack.i.l.bf16 %v2887_v0 }
 0x185   : > { %v2893_v62 = vunpack.i.l.bf16 %v2892_v36  ;;  %v2894_v54 = vunpack.i.h.bf16 %v2892_v36 }
 0x186   : > { %v1766_v6 = vsel %vm1737_vm7, %v1733_v53, %v2888_v21  ;;  %v1767_v59 = vsel %vm1737_vm7, %v1734_v19, %v2889_v33 }
 0x187   : > { %v2897_v22 = vpop.permute.xlu1 %2896  ;;  %v1752_v24 = vsel %vm1737_vm7, %v4473_v3, %v2893_v62  ;;  %v1753_v39 = vsel %vm1737_vm7, %v1720_v47, %v2894_v54 }
 0x188   : > { %v2902_v12 = vpop.permute.xlu0 %2901  ;;  %v2898_v20 = vunpack.i.l.bf16 %v2897_v22  ;;  %v2899_v46 = vunpack.i.h.bf16 %v2897_v22 }
 0x189   : > { %v2904_v25 = vunpack.i.h.bf16 %v2902_v12  ;;  %v2903_v30 = vunpack.i.l.bf16 %v2902_v12 }
 0x18a   : > { %v1768_v63 = vsel %vm1737_vm7, %v1735_v56, %v2898_v20  ;;  %v1769_v57 = vsel %vm1737_vm7, %v1736_v9, %v2899_v46 }
 0x18b   : > { %v2907_v34 = vpop.permute.xlu1 %2906  ;;  %v1783_v17 = vsel %vm1770_vm8, %v1750_v42, %v2903_v30  ;;  %v1784_v38 = vsel %vm1770_vm8, %v1751_v60, %v2904_v25  ;;  %v4269_v60 = vld [vmem:[%s4379_s2] ss:$0 sm:$0xff] }
 0x18c   : > { %v2912_v48 = vpop.permute.xlu0 %2911  ;;  %v2909_v32 = vunpack.i.h.bf16 %v2907_v34  ;;  %v2908_v23 = vunpack.i.l.bf16 %v2907_v34 }
 0x18d   : > { %v2913_v13 = vunpack.i.l.bf16 %v2912_v48  ;;  %v2914_v26 = vunpack.i.h.bf16 %v2912_v48 }
 0x18e   : > { %v1799_v61 = vsel %vm1770_vm8, %v1766_v6, %v2908_v23  ;;  %v1800_v11 = vsel %vm1770_vm8, %v1767_v59, %v2909_v32 }
 0x18f   : > { %v4213_v18 = vpop.permute.xlu1 %2916  ;;  %v1785_v28 = vsel %vm1770_vm8, %v1752_v24, %v2913_v13  ;;  %v1786_v49 = vsel %vm1770_vm8, %v1753_v39, %v2914_v26 }
 0x190   : > { %v2922_v55 = vpop.permute.xlu0 %2921  ;;  %v2919_v1 = vunpack.i.h.bf16 %v4213_v18  ;;  %v2918_v37 = vunpack.i.l.bf16 %v4213_v18 }
 0x191   : > { %v2924_v10 = vunpack.i.h.bf16 %v2922_v55  ;;  %v2923_v45 = vunpack.i.l.bf16 %v2922_v55 }
 0x192   : > { %v1801_v62 = vsel %vm1770_vm8, %v1768_v63, %v2918_v37  ;;  %v1802_v54 = vsel %vm1770_vm8, %v1769_v57, %v2919_v1 }
 0x193   : > { %v2927_v58 = vpop.permute.xlu1 %2926  ;;  %v1816_v36 = vsel %vm1803_vm9, %v1783_v17, %v2923_v45  ;;  %v1817_v22 = vsel %vm1803_vm9, %v1784_v38, %v2924_v10 }
 0x194   : > { %v2932_v50 = vpop.permute.xlu0 %2931  ;;  %v2928_v7 = vunpack.i.l.bf16 %v2927_v58  ;;  %v2929_v41 = vunpack.i.h.bf16 %v2927_v58 }
 0x195   : > { %v2934_v12 = vunpack.i.h.bf16 %v2932_v50  ;;  %v2933_v34 = vunpack.i.l.bf16 %v2932_v50 }
 0x196   : > { %v1832_v43 = vsel %vm1803_vm9, %v1799_v61, %v2928_v7  ;;  %v1833_v2 = vsel %vm1803_vm9, %v1800_v11, %v2929_v41 }
 0x197   : > { %v2937_v29 = vpop.permute.xlu1 %2936  ;;  %v1818_v19 = vsel %vm1803_vm9, %v1785_v28, %v2933_v34  ;;  %v1819_v18 = vsel %vm1803_vm9, %v1786_v49, %v2934_v12 }
 0x198   : > { %v2942_v5 = vpop.permute.xlu0 %2941  ;;  %v2939_v47 = vunpack.i.h.bf16 %v2937_v29  ;;  %v2938_v4 = vunpack.i.l.bf16 %v2937_v29 }
 0x199   : > { %v2944_v35 = vunpack.i.h.bf16 %v2942_v5  ;;  %v2943_v0 = vunpack.i.l.bf16 %v2942_v5 }
 0x19a   : > { %v1834_v46 = vsel %vm1803_vm9, %v1801_v62, %v2938_v4  ;;  %v1835_v25 = vsel %vm1803_vm9, %v1802_v54, %v2939_v47 }
 0x19b   : > { %v1849_v48 = vsel %vm1836_vm10, %v1816_v36, %v2943_v0  ;;  %v1850_v40 = vsel %vm1836_vm10, %v1817_v22, %v2944_v35  ;;  %v2947_v27 = vpop.permute.xlu1 %2946 }
 0x19c   : > { %v1875_v8 = vpack.c.bf16 %v1850_v40, %v1849_v48  ;;  %v2949_v14 = vunpack.i.h.bf16 %v2947_v27  ;;  %v2948_v53 = vunpack.i.l.bf16 %v2947_v27  ;;  %v2952_v44 = vpop.permute.xlu0 %2951 }
 0x19d   : > { %v2954_v55 = vunpack.i.h.bf16 %v2952_v44  ;;  %v2953_v16 = vunpack.i.l.bf16 %v2952_v44 }
 0x19e   : > { %v1865_v33 = vsel %vm1836_vm10, %v1832_v43, %v2948_v53  ;;  %v1866_v21 = vsel %vm1836_vm10, %v1833_v2, %v2949_v14  ;;  %2278 = vmatprep.mubr.msk.bf16.mxu0 %vm1907_vm11, %v1875_v8 }
 0x19f   : > { %v1883_v52 = vpack.c.bf16 %v1866_v21, %v1865_v33  ;;  %v1851_v56 = vsel %vm1836_vm10, %v1818_v19, %v2953_v16  ;;  %v1852_v51 = vsel %vm1836_vm10, %v1819_v18, %v2954_v55  ;;  %v2957_v9 = vpop.permute.xlu1 %2956 }
 0x1a0   : > { %v1876_v20 = vpack.c.bf16 %v1852_v51, %v1851_v56  ;;  %v2959_v31 = vunpack.i.h.bf16 %v2957_v9  ;;  %v2958_v42 = vunpack.i.l.bf16 %v2957_v9 }
 0x1a1   : > { %2294 = vmatprep.mubr.msk.bf16.mxu1 %vm1907_vm11, %v1883_v52 }
 0x1a2   : > { %v1867_v30 = vsel %vm1836_vm10, %v1834_v46, %v2958_v42  ;;  %v1868_v58 = vsel %vm1836_vm10, %v1835_v25, %v2959_v31  ;;  %2279 = vmatmul.mubr.msk.bf16.gmra.mxu0 %vm1907_vm11, %v1876_v20 }
 0x1a3   : > { %v1884_v15 = vpack.c.bf16 %v1868_v58, %v1867_v30 }
 0x1a5   : > { %2295 = vmatmul.mubr.msk.bf16.gmra.mxu1 %vm1907_vm11, %v1884_v15 }
 0x1f6   : > { %v2268_v32 = vpop.f32.mrf.mxu0 }
 0x1f7   : > { %v2006_v23 = vadd.f32 %v2268_v32, %v4269_v60 }
 0x1f8   : > { %v1997_v13 = vpop.f32.mrf.mxu0 }
 0x1f9   : > { %2127 = vst.msk [vmem:[%s4276_s8 + $0x10] sm:$0xff] %vm2124_vm12, %v2006_v23  ;;  %v1998_v50 = vadd.f32 %v4269_v60, %v1997_v13  ;;  %v2284_v6 = vpop.f32.mrf.mxu1 }
 0x1fa   : > { %v2269_v59 = vpop.f32.mrf.mxu0  ;;  %v2070_v3 = vadd.f32 %v2284_v6, %v4269_v60 }
 0x1fb   : > { %2125 = vst.msk [vmem:[%s4276_s8] sm:$0xff] %vm2124_vm12, %v1998_v50  ;;  %v2009_v24 = vadd.f32 %v2269_v59, %v4269_v60  ;;  %v2061_v26 = vpop.f32.mrf.mxu1 }
 0x1fc   : > { %2143 = vst.msk [vmem:[%s4276_s8 + $0x90] sm:$0xff] %vm2124_vm12, %v2070_v3  ;;  %v2000_v39 = vpop.f32.mrf.mxu0  ;;  %v2062_v63 = vadd.f32 %v4269_v60, %v2061_v26 }
 0x1fd   : > { %2128 = vst.msk [vmem:[%s4276_s8 + $0x18] sm:$0xff] %vm2124_vm12, %v2009_v24  ;;  %v2001_v10 = vadd.f32 %v4269_v60, %v2000_v39  ;;  %v2285_v45 = vpop.f32.mrf.mxu1 }
 0x1fe   : > { %2141 = vst.msk [vmem:[%s4276_s8 + $0x80] sm:$0xff] %vm2124_vm12, %v2062_v63  ;;  %v2073_v57 = vadd.f32 %v2285_v45, %v4269_v60 }
 0x1ff   : > { %2126 = vst.msk [vmem:[%s4276_s8 + $0x8] sm:$0xff] %vm2124_vm12, %v2001_v10  ;;  %v2064_v17 = vpop.f32.mrf.mxu1 }
 0x200   : > { %2144 = vst.msk [vmem:[%s4276_s8 + $0x98] sm:$0xff] %vm2124_vm12, %v2073_v57  ;;  %v2065_v38 = vadd.f32 %v4269_v60, %v2064_v17 }
 0x202   : > { %2142 = vst.msk [vmem:[%s4276_s8 + $0x88] sm:$0xff] %vm2124_vm12, %v2065_v38 }
 0x21a   : > { %v2272_v7 = vpop.f32.mrf.mxu0 }
 0x21b   : > { %v2022_v29 = vadd.f32 %v2272_v7, %v4269_v60 }
 0x21c   : > { %v2013_v61 = vpop.f32.mrf.mxu0 }
 0x21d   : > { %2131 = vst.msk [vmem:[%s4276_s8 + $0x30] sm:$0xff] %vm2124_vm12, %v2022_v29  ;;  %v2014_v11 = vadd.f32 %v4269_v60, %v2013_v61  ;;  %v2288_v28 = vpop.f32.mrf.mxu1 }
 0x21e   : > { %v2273_v41 = vpop.f32.mrf.mxu0  ;;  %v2086_v5 = vadd.f32 %v2288_v28, %v4269_v60 }
 0x21f   : > { %2129 = vst.msk [vmem:[%s4276_s8 + $0x20] sm:$0xff] %vm2124_vm12, %v2014_v11  ;;  %v2025_v49 = vadd.f32 %v2273_v41, %v4269_v60  ;;  %v2077_v1 = vpop.f32.mrf.mxu1 }
 0x220   : > { %2147 = vst.msk [vmem:[%s4276_s8 + $0xb0] sm:$0xff] %vm2124_vm12, %v2086_v5  ;;  %v2016_v35 = vpop.f32.mrf.mxu0  ;;  %v2078_v0 = vadd.f32 %v4269_v60, %v2077_v1 }
 0x221   : > { %2132 = vst.msk [vmem:[%s4276_s8 + $0x38] sm:$0xff] %vm2124_vm12, %v2025_v49  ;;  %v2017_v36 = vadd.f32 %v4269_v60, %v2016_v35  ;;  %v2289_v22 = vpop.f32.mrf.mxu1 }
 0x222   : > { %2145 = vst.msk [vmem:[%s4276_s8 + $0xa0] sm:$0xff] %vm2124_vm12, %v2078_v0  ;;  %v2089_v12 = vadd.f32 %v2289_v22, %v4269_v60 }
 0x223   : > { %2130 = vst.msk [vmem:[%s4276_s8 + $0x28] sm:$0xff] %vm2124_vm12, %v2017_v36  ;;  %v2080_v34 = vpop.f32.mrf.mxu1 }
 0x224   : > { %2148 = vst.msk [vmem:[%s4276_s8 + $0xb8] sm:$0xff] %vm2124_vm12, %v2089_v12  ;;  %v2081_v37 = vadd.f32 %v4269_v60, %v2080_v34 }
 0x226   : > { %2146 = vst.msk [vmem:[%s4276_s8 + $0xa8] sm:$0xff] %vm2124_vm12, %v2081_v37 }
 0x23e   : > { %v2276_v43 = vpop.f32.mrf.mxu0 }
 0x23f   : > { %v2038_v48 = vadd.f32 %v2276_v43, %v4269_v60 }
 0x240   : > { %v2029_v40 = vpop.f32.mrf.mxu0 }
 0x241   : > { %2135 = vst.msk [vmem:[%s4276_s8 + $0x50] sm:$0xff] %vm2124_vm12, %v2038_v48  ;;  %v2030_v27 = vadd.f32 %v4269_v60, %v2029_v40  ;;  %v2292_v2 = vpop.f32.mrf.mxu1 }
 0x242   : > { %v2277_v8 = vpop.f32.mrf.mxu0  ;;  %v2102_v14 = vadd.f32 %v2292_v2, %v4269_v60 }
 0x243   : > { %2133 = vst.msk [vmem:[%s4276_s8 + $0x40] sm:$0xff] %vm2124_vm12, %v2030_v27  ;;  %v2041_v53 = vadd.f32 %v2277_v8, %v4269_v60  ;;  %v2093_v44 = vpop.f32.mrf.mxu1 }
 0x244   : > { %2151 = vst.msk [vmem:[%s4276_s8 + $0xd0] sm:$0xff] %vm2124_vm12, %v2102_v14  ;;  %v2032_v47 = vpop.f32.mrf.mxu0  ;;  %v2094_v4 = vadd.f32 %v4269_v60, %v2093_v44 }
 0x245   : > { %2136 = vst.msk [vmem:[%s4276_s8 + $0x58] sm:$0xff] %vm2124_vm12, %v2041_v53  ;;  %v2033_v55 = vadd.f32 %v4269_v60, %v2032_v47  ;;  %v2293_v16 = vpop.f32.mrf.mxu1 }
 0x246   : > { %2149 = vst.msk [vmem:[%s4276_s8 + $0xc0] sm:$0xff] %vm2124_vm12, %v2094_v4  ;;  %v2105_v19 = vadd.f32 %v2293_v16, %v4269_v60 }
 0x247   : > { %2134 = vst.msk [vmem:[%s4276_s8 + $0x48] sm:$0xff] %vm2124_vm12, %v2033_v55  ;;  %v2096_v18 = vpop.f32.mrf.mxu1 }
 0x248   : > { %2152 = vst.msk [vmem:[%s4276_s8 + $0xd8] sm:$0xff] %vm2124_vm12, %v2105_v19  ;;  %v2097_v33 = vadd.f32 %v4269_v60, %v2096_v18 }
 0x24a   : > { %2150 = vst.msk [vmem:[%s4276_s8 + $0xc8] sm:$0xff] %vm2124_vm12, %v2097_v33 }
 0x262   : > { %v2280_v21 = vpop.f32.mrf.mxu0 }
 0x263   : > { %v2054_v62 = vadd.f32 %v2280_v21, %v4269_v60 }
 0x264   : > { %v2045_v52 = vpop.f32.mrf.mxu0 }
 0x265   : > { %2139 = vst.msk [vmem:[%s4276_s8 + $0x70] sm:$0xff] %vm2124_vm12, %v2054_v62  ;;  %v2046_v56 = vadd.f32 %v4269_v60, %v2045_v52  ;;  %v2296_v51 = vpop.f32.mrf.mxu1 }
 0x266   : > { %v2281_v9 = vpop.f32.mrf.mxu0  ;;  %v2118_v54 = vadd.f32 %v2296_v51, %v4269_v60 }
 0x267   : > { %2137 = vst.msk [vmem:[%s4276_s8 + $0x60] sm:$0xff] %vm2124_vm12, %v2046_v56  ;;  %v2057_v20 = vadd.f32 %v2281_v9, %v4269_v60  ;;  %v2109_v31 = vpop.f32.mrf.mxu1 }
 0x268   : > { %2155 = vst.msk [vmem:[%s4276_s8 + $0xf0] sm:$0xff] %vm2124_vm12, %v2118_v54  ;;  %v2048_v42 = vpop.f32.mrf.mxu0  ;;  %v2110_v46 = vadd.f32 %v4269_v60, %v2109_v31 }
 0x269   : > { %2140 = vst.msk [vmem:[%s4276_s8 + $0x78] sm:$0xff] %vm2124_vm12, %v2057_v20  ;;  %v2049_v25 = vadd.f32 %v4269_v60, %v2048_v42  ;;  %v2297_v30 = vpop.f32.mrf.mxu1 }
 0x26a   : > { %2153 = vst.msk [vmem:[%s4276_s8 + $0xe0] sm:$0xff] %vm2124_vm12, %v2110_v46  ;;  %v2121_v58 = vadd.f32 %v2297_v30, %v4269_v60 }
 0x26b   : > { %2138 = vst.msk [vmem:[%s4276_s8 + $0x68] sm:$0xff] %vm2124_vm12, %v2049_v25  ;;  %v2112_v15 = vpop.f32.mrf.mxu1 }
 0x26c   : > { %2156 = vst.msk [vmem:[%s4276_s8 + $0xf8] sm:$0xff] %vm2124_vm12, %v2121_v58  ;;  %v2113_v32 = vadd.f32 %v4269_v60, %v2112_v15 }
 0x26e   : > { %2154 = vst.msk [vmem:[%s4276_s8 + $0xe8] sm:$0xff] %vm2124_vm12, %v2113_v32 }
 0x26f PF: > { %s13_s12 = sadd.s32 1, %s2972_s12  }
 0x270   : > { %p10_p4 = scmp.ge.s32.totalorder %s13_s12, 4  }
 0x272   :  { %12 = sbr.rel (!%p10_p4) target bundleno = 1 (0x1), region = 64 }

</bundles_post_ra>
